<compile_context>
chip_gen: v7x
topology: tpu7x:2x2x1
jax: 0.10.0
libtpu: 0.0.40
codegen_flags: <defaults>
</compile_context>

<pallas_src>
import functools

import jax
import jax.numpy as jnp
from jax.experimental import pallas as pl
from jax.experimental.pallas import tpu as pltpu

# ----- module hyper-params (globals `nc`, `nz`, `ngf` in the PyTorch file) ---
nc = 4     # image channels
nz = 8     # latent channels
ngf = 8    # generator feature width
BN_EPS = 1e-5


def _round_up(x, m):
    return (x + m - 1) // m * m


def _cdiv(a, b):
    return (a + b - 1) // b


def _lane_tile(M):
    """Tile size along the lane (last) axis.

    One block for M <= 1024; otherwise an even number of blocks so the v7x
    megacore gets a balanced split (M = 2178 -> 2 x 1152, ~6% pad)."""
    m128 = _round_up(M, 128)
    if m128 <= 1024:
        return m128
    nblk = 2 * _cdiv(m128, 4096)
    return _round_up(_cdiv(M, nblk), 128)


# ------------------------------ Pallas kernels -------------------------------
def _matmul_act_kernel(a_ref, b_ref, o_ref, *, act, alpha):
    # bf16 x bf16 -> f32 accumulate on the MXU; activation epilogue in f32.
    acc = jnp.dot(a_ref[...], b_ref[...], preferred_element_type=jnp.float32)
    if act == "leaky":
        acc = jnp.where(acc > 0, acc, alpha * acc)
    elif act == "tanh":
        acc = jnp.tanh(acc)
    o_ref[...] = acc.astype(o_ref.dtype)


def matmul_act(A, B, act="none", alpha=0.2, out_dtype=jnp.bfloat16):
    """act(A @ B).  A: (R, K) small-R operand, B: (K, M) lane-major operand.

    R is padded to 8 sublanes, K only to 16 (bf16 sublane quantum — never 128),
    M to the lane tile.  Returns the padded (R_pad, M_pad) array; callers slice
    (a no-op when dims are already aligned)."""
    R, K = A.shape
    Kb, M = B.shape
    assert K == Kb, (A.shape, B.shape)
    R_pad = _round_up(R, 8)
    K_pad = _round_up(K, 16)
    tn = _lane_tile(M)
    nblk = _cdiv(M, tn)
    M_pad = nblk * tn

    A_p = A.astype(jnp.bfloat16)
    if (R_pad, K_pad) != (R, K):
        A_p = jnp.pad(A_p, ((0, R_pad - R), (0, K_pad - K)))
    B_p = B.astype(jnp.bfloat16)
    if (K_pad, M_pad) != (K, M):
        B_p = jnp.pad(B_p, ((0, K_pad - K), (0, M_pad - M)))

    kernel = functools.partial(_matmul_act_kernel, act=act, alpha=alpha)
    return pl.pallas_call(
        kernel,
        out_shape=jax.ShapeDtypeStruct((R_pad, M_pad), out_dtype),
        grid_spec=pltpu.PrefetchScalarGridSpec(
            num_scalar_prefetch=0,
            grid=(nblk,),
            in_specs=[
                pl.BlockSpec((R_pad, K_pad), lambda i: (0, 0)),
                pl.BlockSpec((K_pad, tn), lambda i: (0, i)),
            ],
            out_specs=pl.BlockSpec((R_pad, tn), lambda i: (0, i)),
        ),
        compiler_params=pltpu.CompilerParams(dimension_semantics=("parallel",)),
    )(A_p, B_p)


def _scale_bias_relu_kernel(x_ref, s_ref, b_ref, o_ref):
    y = x_ref[...].astype(jnp.float32) * s_ref[...] + b_ref[...]
    o_ref[...] = jnp.maximum(y, 0.0).astype(o_ref.dtype)


def scale_bias_relu(x, scale, bias):
    """Per-channel (sublane) affine + ReLU on a channels-first (C, M) array."""
    C, M = x.shape
    tn = _lane_tile(M)
    nblk = _cdiv(M, tn)
    M_pad = nblk * tn
    x_p = x if M_pad == M else jnp.pad(x, ((0, 0), (0, M_pad - M)))
    return pl.pallas_call(
        _scale_bias_relu_kernel,
        out_shape=jax.ShapeDtypeStruct((C, M_pad), jnp.bfloat16),
        grid_spec=pltpu.PrefetchScalarGridSpec(
            num_scalar_prefetch=0,
            grid=(nblk,),
            in_specs=[
                pl.BlockSpec((C, tn), lambda i: (0, i)),
                pl.BlockSpec((C, 1), lambda i: (0, 0)),
                pl.BlockSpec((C, 1), lambda i: (0, 0)),
            ],
            out_specs=pl.BlockSpec((C, tn), lambda i: (0, i)),
        ),
        compiler_params=pltpu.CompilerParams(dimension_semantics=("parallel",)),
    )(x_p, scale, bias)


# ------------------------- conv layers (channels-first) ----------------------
def _im2col_cf(x, kh, kw, stride, pad):
    """x: (C, N, H, W) -> patches (kh*kw*C, N*OH*OW), row order (i, j, c)."""
    if pad:
        x = jnp.pad(x, ((0, 0), (0, 0), (pad, pad), (pad, pad)))
    C, N, H, W = x.shape
    OH = (H - kh) // stride + 1
    OW = (W - kw) // stride + 1
    rows = []
    for i in range(kh):
        for j in range(kw):
            rows.append(
                x[:, :, i:i + stride * (OH - 1) + 1:stride,
                        j:j + stride * (OW - 1) + 1:stride].reshape(C, N * OH * OW))
    return jnp.concatenate(rows, axis=0), OH, OW


def conv2d_cf(x, w_mat, Cout, KH, KW, stride, pad, act="none", alpha=0.2):
    """Direct conv.  x: (Cin, N, H, W) bf16; w_mat: prepped (Cout_pad8, KH*KW*Cin)."""
    Cin, N, H, W = x.shape
    P, OH, OW = _im2col_cf(x, KH, KW, stride, pad)
    out = matmul_act(w_mat, P, act=act, alpha=alpha)
    return out[:Cout, :N * OH * OW].reshape(Cout, N, OH, OW)


def conv_transpose2d_s2_cf(x, w_mat4, Cout, act="none", out_dtype=jnp.bfloat16):
    """ConvTranspose2d(k=4, stride=2, pad=1) via output-parity decomposition.

    One (4*Cout, 4*Cin) @ (4*Cin, N*(H+1)*(W+1)) matmul covers all four output
    parity classes over the un-stuffed input; then a cheap de-interleave."""
    Cin, N, H, W = x.shape
    P, OHp, OWp = _im2col_cf(x, 2, 2, 1, 1)          # (4*Cin, N*(H+1)*(W+1))
    O = matmul_act(w_mat4, P, act=act, out_dtype=out_dtype)
    O = O[:4 * Cout, :N * OHp * OWp].reshape(4, Cout, N, OHp, OWp)
    # TODO(synk): keep this parity-blocked layout as the inter-layer format.
    rows = []
    for r in range(2):
        per_s = [O[2 * r + s, :, :, r:r + H, s:s + W] for s in range(2)]
        rows.append(jnp.stack(per_s, axis=-1))       # (Cout, N, H, W, 2)
    y = jnp.stack(rows, axis=3)                      # (Cout, N, H, 2, W, 2)
    return y.reshape(Cout, N, 2 * H, 2 * W)


def batchnorm_relu_cf(y):
    """Training-mode BatchNorm2d (gamma=1, beta=0, biased var) + ReLU.

    y: (C, N, H, W) bf16 channels-first.  Moments accumulated in f32 (tiny XLA
    lane reductions, fused under jit); affine+ReLU is a lane-dense Pallas kernel."""
    C, N, H, W = y.shape
    M = N * H * W
    yf = y.reshape(C, M)
    y32 = yf.astype(jnp.float32)
    s1 = jnp.sum(y32, axis=1)
    s2 = jnp.sum(y32 * y32, axis=1)
    mean = s1 / M
    var = jnp.maximum(s2 / M - mean * mean, 0.0)
    scale = jax.lax.rsqrt(var + BN_EPS)
    bias = -mean * scale
    out = scale_bias_relu(yf, scale.reshape(C, 1), bias.reshape(C, 1))
    return out[:, :M].reshape(C, N, H, W)


# ------------------------ weight pre-processing (once) -----------------------
def _conv_weight_cf(w_oihw):
    """Conv2d weight (Cout,Cin,KH,KW) -> (round_up(Cout,8), KH*KW*Cin) bf16,
    columns ordered (ki, kj, ci) to match _im2col_cf rows."""
    Cout, Cin, KH, KW = w_oihw.shape
    A = jnp.transpose(w_oihw, (0, 2, 3, 1)).reshape(Cout, KH * KW * Cin)
    Cp = _round_up(Cout, 8)
    if Cp != Cout:
        A = jnp.pad(A, ((0, Cp - Cout), (0, 0)))
    return A.astype(jnp.bfloat16)


def _deconv_first_cf(w_iohw):
    """ConvTranspose2d(4,1,0) on 1x1 input -> (Cin, 16*Cout), columns (co,ki,kj)."""
    Cin, Cout = w_iohw.shape[0], w_iohw.shape[1]
    return w_iohw.reshape(Cin, Cout * 16).astype(jnp.bfloat16)


def _deconv_parity_cf(w_iohw):
    """ConvTranspose2d(4,2,1) weight (Cin,Cout,4,4) -> (4*Cout, 4*Cin) bf16.

    Row block (r, s) holds the 2x2 sub-kernel w[ci, co, 3-2u-r, 3-2v-s] with
    columns ordered (u, v, ci) to match _im2col_cf's patch row order."""
    Cin, Cout = w_iohw.shape[0], w_iohw.shape[1]
    blocks = []
    for r in range(2):
        for s in range(2):
            ki = jnp.array([3 - r, 1 - r])           # u = 0, 1
            kj = jnp.array([3 - s, 1 - s])           # v = 0, 1
            sub = w_iohw[:, :, ki, :][:, :, :, kj]   # (Cin, Cout, 2, 2)
            blocks.append(jnp.transpose(sub, (1, 2, 3, 0)).reshape(Cout, 4 * Cin))
    return jnp.concatenate(blocks, axis=0).astype(jnp.bfloat16)


def init_params(key):
    ks = jax.random.split(key, 10)
    down = []
    for i in range(5):
        w = 0.02 * jax.random.normal(ks[i], (nc, nc, 4, 4), jnp.float32)
        down.append(_conv_weight_cf(w))
    shapes = [(nz + nc, ngf * 8), (ngf * 8, ngf * 4), (ngf * 4, ngf * 2),
              (ngf * 2, ngf), (ngf, nc)]
    main = []
    for i, (ci, co) in enumerate(shapes):
        w = 0.02 * jax.random.normal(ks[5 + i], (ci, co, 4, 4), jnp.float32)
        main.append(_deconv_first_cf(w) if i == 0 else _deconv_parity_cf(w))
    return {"down": down, "main": main}


# --------------------------------- forward -----------------------------------
def generator_forward(params, latent_nchw, condition_nchw):
    couts = (ngf * 8, ngf * 4, ngf * 2, ngf, nc)
    N = latent_nchw.shape[0]

    # ---- downsample(condition): 64 -> 32 -> 16 -> 8 -> 4 -> 1 ----
    x = jnp.transpose(condition_nchw, (1, 0, 2, 3)).astype(jnp.bfloat16)  # (C,N,H,W)
    for k in range(4):
        x = conv2d_cf(x, params["down"][k], Cout=nc, KH=4, KW=4,
                      stride=2, pad=1, act="leaky", alpha=0.2)
    x = conv2d_cf(x, params["down"][4], Cout=nc, KH=4, KW=4,
                  stride=4, pad=0, act="none")                            # (nc,N,1,1)

    # ---- cat([input, condition], dim=1), channels-first ----
    z = jnp.transpose(latent_nchw.reshape(N, nz), (1, 0)).astype(jnp.bfloat16)
    h = jnp.concatenate([z, x.reshape(nc, N)], axis=0)                    # (nz+nc, N)

    # ---- main: 1 -> 4 -> 8 -> 16 -> 32 -> 64 ----
    # ConvTranspose2d(nz+nc, ngf*8, 4, 1, 0) on a 1x1 input == one matmul with
    # the big dim (16*Cout = 1024) on lanes.
    o = matmul_act(h.T, params["main"][0])                                # (8, 1024)
    o = o[:N, :16 * couts[0]].reshape(N, couts[0], 4, 4)
    y = jnp.transpose(o, (1, 0, 2, 3))                                    # (C0,N,4,4)
    y = batchnorm_relu_cf(y)

    for li in range(1, 4):                                                # 4->8->16->32
        y = conv_transpose2d_s2_cf(y, params["main"][li], couts[li])
        y = batchnorm_relu_cf(y)
    y = conv_transpose2d_s2_cf(y, params["main"][4], couts[4],            # 32 -> 64
                               act="tanh", out_dtype=jnp.float32)
    return jnp.transpose(y, (1, 0, 2, 3))                                 # NCHW f32


if __name__ == "__main__":
    key = jax.random.PRNGKey(0)
    k_p, k_z, k_c = jax.random.split(key, 3)
    params = init_params(k_p)

    batch = 2
    latent = jax.random.normal(k_z, (batch, nz, 1, 1), jnp.float32)
    # condition must be 64x64 so the downsample stack (2^4 * 4) reduces to 1x1
    condition = jax.random.normal(k_c, (batch, nc, 64, 64), jnp.float32)

    fwd = jax.jit(generator_forward)
    out = jax.block_until_ready(fwd(params, latent, condition))

    assert out.shape == (batch, nc, 64, 64), out.shape
    assert bool(jnp.all(jnp.isfinite(out)))
    assert bool(jnp.all(jnp.abs(out) <= 1.0))   # tanh output range
    print("KERNEL_OK")
</pallas_src>

<mosaic_0001>
module attributes {stable_mosaic.version = 11 : i64} {
  func.func @_matmul_act_kernel(%arg0: i32, %arg1: memref<8x64xbf16, #tpu.memory_space<vmem>>, %arg2: memref<64x1024xbf16, #tpu.memory_space<vmem>>, %arg3: memref<8x1024xbf16, #tpu.memory_space<vmem>>) attributes {dimension_semantics = [#tpu.dimension_semantics<parallel>], iteration_bounds = array<i64: 2>, scalar_prefetch = 0 : i64, scratch_operands = 0 : i64, tpu.core_type = #tpu.core_type<tc>, window_params = [{pipeline_mode = #tpu.pipeline_mode<synchronous>, transform_indices = @transform_0, window_bounds = array<i64: 8, 64>}, {transform_indices = @transform_1, window_bounds = array<i64: 64, 1024>}, {transform_indices = @transform_2, window_bounds = array<i64: 8, 1024>}]} {
    %c0 = arith.constant 0 : index
    %c0_0 = arith.constant 0 : index
    %0 = vector.load %arg1[%c0, %c0_0] : memref<8x64xbf16, #tpu.memory_space<vmem>>, vector<8x64xbf16>
    %c0_1 = arith.constant 0 : index
    %c0_2 = arith.constant 0 : index
    %1 = vector.load %arg2[%c0_1, %c0_2] : memref<64x1024xbf16, #tpu.memory_space<vmem>>, vector<64x1024xbf16>
    %cst = arith.constant dense<0.000000e+00> : vector<8x1024xf32>
    %2 = tpu.matmul %0, %1, %cst {dimension_numbers = #tpu.dot_dimension_numbers<[1], [0], [0], [1], [0, 0, 1, 1], [], []>} : vector<8x64xbf16>, vector<64x1024xbf16>, vector<8x1024xf32> -> vector<8x1024xf32>
    %cst_3 = arith.constant 0.000000e+00 : f32
    %3 = vector.broadcast %cst_3 : f32 to vector<8x1024xf32>
    %4 = arith.cmpf ogt, %2, %3 : vector<8x1024xf32>
    %cst_4 = arith.constant 2.000000e-01 : f32
    %5 = vector.broadcast %cst_4 : f32 to vector<8x1024xf32>
    %6 = arith.mulf %5, %2 : vector<8x1024xf32>
    %7 = arith.select %4, %2, %6 : vector<8x1024xi1>, vector<8x1024xf32>
    %8 = arith.truncf %7 : vector<8x1024xf32> to vector<8x1024xbf16>
    %c0_5 = arith.constant 0 : index
    %c0_6 = arith.constant 0 : index
    %9 = vector.load %arg3[%c0_5, %c0_6] : memref<8x1024xbf16, #tpu.memory_space<vmem>>, vector<8x1024xbf16>
    tpu.vector_store %arg3[%c0_5, %c0_6], %8 {strides = array<i32>} : memref<8x1024xbf16, #tpu.memory_space<vmem>>, vector<8x1024xbf16>,
    return
  }
  func.func @transform_0(%arg0: i32) -> (i32, i32) {
    %c0_i32 = arith.constant 0 : i32
    %c0_i32_0 = arith.constant 0 : i32
    %c0_i32_1 = arith.constant 0 : i32
    return %c0_i32, %c0_i32_0 : i32, i32
  }
  func.func @transform_1(%arg0: i32) -> (i32, i32) {
    %c0_i32 = arith.constant 0 : i32
    %c0_i32_0 = arith.constant 0 : i32
    return %c0_i32, %arg0 : i32, i32
  }
  func.func @transform_2(%arg0: i32) -> (i32, i32) {
    %c0_i32 = arith.constant 0 : i32
    %c0_i32_0 = arith.constant 0 : i32
    return %c0_i32, %arg0 : i32, i32
  }
}

module attributes {stable_mosaic.version = 11 : i64} {
  func.func @_matmul_act_kernel(%arg0: i32, %arg1: memref<8x64xbf16, #tpu.memory_space<vmem>>, %arg2: memref<64x512xbf16, #tpu.memory_space<vmem>>, %arg3: memref<8x512xbf16, #tpu.memory_space<vmem>>) attributes {dimension_semantics = [#tpu.dimension_semantics<parallel>], iteration_bounds = array<i64: 1>, scalar_prefetch = 0 : i64, scratch_operands = 0 : i64, tpu.core_type = #tpu.core_type<tc>, window_params = [{pipeline_mode = #tpu.pipeline_mode<synchronous>, transform_indices = @transform_0, window_bounds = array<i64: 8, 64>}, {transform_indices = @transform_1, window_bounds = array<i64: 64, 512>}, {transform_indices = @transform_2, window_bounds = array<i64: 8, 512>}]} {
    %c0 = arith.constant 0 : index
    %c0_0 = arith.constant 0 : index
    %0 = vector.load %arg1[%c0, %c0_0] : memref<8x64xbf16, #tpu.memory_space<vmem>>, vector<8x64xbf16>
    %c0_1 = arith.constant 0 : index
    %c0_2 = arith.constant 0 : index
    %1 = vector.load %arg2[%c0_1, %c0_2] : memref<64x512xbf16, #tpu.memory_space<vmem>>, vector<64x512xbf16>
    %cst = arith.constant dense<0.000000e+00> : vector<8x512xf32>
    %2 = tpu.matmul %0, %1, %cst {dimension_numbers = #tpu.dot_dimension_numbers<[1], [0], [0], [1], [0, 0, 1, 1], [], []>} : vector<8x64xbf16>, vector<64x512xbf16>, vector<8x512xf32> -> vector<8x512xf32>
    %cst_3 = arith.constant 0.000000e+00 : f32
    %3 = vector.broadcast %cst_3 : f32 to vector<8x512xf32>
    %4 = arith.cmpf ogt, %2, %3 : vector<8x512xf32>
    %cst_4 = arith.constant 2.000000e-01 : f32
    %5 = vector.broadcast %cst_4 : f32 to vector<8x512xf32>
    %6 = arith.mulf %5, %2 : vector<8x512xf32>
    %7 = arith.select %4, %2, %6 : vector<8x512xi1>, vector<8x512xf32>
    %8 = arith.truncf %7 : vector<8x512xf32> to vector<8x512xbf16>
    %c0_5 = arith.constant 0 : index
    %c0_6 = arith.constant 0 : index
    %9 = vector.load %arg3[%c0_5, %c0_6] : memref<8x512xbf16, #tpu.memory_space<vmem>>, vector<8x512xbf16>
    tpu.vector_store %arg3[%c0_5, %c0_6], %8 {strides = array<i32>} : memref<8x512xbf16, #tpu.memory_space<vmem>>, vector<8x512xbf16>,
    return
  }
  func.func @transform_0(%arg0: i32) -> (i32, i32) {
    %c0_i32 = arith.constant 0 : i32
    %c0_i32_0 = arith.constant 0 : i32
    %c0_i32_1 = arith.constant 0 : i32
    return %c0_i32, %c0_i32_0 : i32, i32
  }
  func.func @transform_1(%arg0: i32) -> (i32, i32) {
    %c0_i32 = arith.constant 0 : i32
    %c0_i32_0 = arith.constant 0 : i32
    return %c0_i32, %arg0 : i32, i32
  }
  func.func @transform_2(%arg0: i32) -> (i32, i32) {
    %c0_i32 = arith.constant 0 : i32
    %c0_i32_0 = arith.constant 0 : i32
    return %c0_i32, %arg0 : i32, i32
  }
}

module attributes {stable_mosaic.version = 11 : i64} {
  func.func @_matmul_act_kernel(%arg0: i32, %arg1: memref<8x64xbf16, #tpu.memory_space<vmem>>, %arg2: memref<64x128xbf16, #tpu.memory_space<vmem>>, %arg3: memref<8x128xbf16, #tpu.memory_space<vmem>>) attributes {dimension_semantics = [#tpu.dimension_semantics<parallel>], iteration_bounds = array<i64: 1>, scalar_prefetch = 0 : i64, scratch_operands = 0 : i64, tpu.core_type = #tpu.core_type<tc>, window_params = [{pipeline_mode = #tpu.pipeline_mode<synchronous>, transform_indices = @transform_0, window_bounds = array<i64: 8, 64>}, {transform_indices = @transform_1, window_bounds = array<i64: 64, 128>}, {transform_indices = @transform_2, window_bounds = array<i64: 8, 128>}]} {
    %c0 = arith.constant 0 : index
    %c0_0 = arith.constant 0 : index
    %0 = vector.load %arg1[%c0, %c0_0] : memref<8x64xbf16, #tpu.memory_space<vmem>>, vector<8x64xbf16>
    %c0_1 = arith.constant 0 : index
    %c0_2 = arith.constant 0 : index
    %1 = vector.load %arg2[%c0_1, %c0_2] : memref<64x128xbf16, #tpu.memory_space<vmem>>, vector<64x128xbf16>
    %cst = arith.constant dense<0.000000e+00> : vector<8x128xf32>
    %2 = tpu.matmul %0, %1, %cst {dimension_numbers = #tpu.dot_dimension_numbers<[1], [0], [0], [1], [0, 0, 1, 1], [], []>} : vector<8x64xbf16>, vector<64x128xbf16>, vector<8x128xf32> -> vector<8x128xf32>
    %cst_3 = arith.constant 0.000000e+00 : f32
    %3 = vector.broadcast %cst_3 : f32 to vector<8x128xf32>
    %4 = arith.cmpf ogt, %2, %3 : vector<8x128xf32>
    %cst_4 = arith.constant 2.000000e-01 : f32
    %5 = vector.broadcast %cst_4 : f32 to vector<8x128xf32>
    %6 = arith.mulf %5, %2 : vector<8x128xf32>
    %7 = arith.select %4, %2, %6 : vector<8x128xi1>, vector<8x128xf32>
    %8 = arith.truncf %7 : vector<8x128xf32> to vector<8x128xbf16>
    %c0_5 = arith.constant 0 : index
    %c0_6 = arith.constant 0 : index
    %9 = vector.load %arg3[%c0_5, %c0_6] : memref<8x128xbf16, #tpu.memory_space<vmem>>, vector<8x128xbf16>
    tpu.vector_store %arg3[%c0_5, %c0_6], %8 {strides = array<i32>} : memref<8x128xbf16, #tpu.memory_space<vmem>>, vector<8x128xbf16>,
    return
  }
  func.func @transform_0(%arg0: i32) -> (i32, i32) {
    %c0_i32 = arith.constant 0 : i32
    %c0_i32_0 = arith.constant 0 : i32
    %c0_i32_1 = arith.constant 0 : i32
    return %c0_i32, %c0_i32_0 : i32, i32
  }
  func.func @transform_1(%arg0: i32) -> (i32, i32) {
    %c0_i32 = arith.constant 0 : i32
    %c0_i32_0 = arith.constant 0 : i32
    return %c0_i32, %arg0 : i32, i32
  }
  func.func @transform_2(%arg0: i32) -> (i32, i32) {
    %c0_i32 = arith.constant 0 : i32
    %c0_i32_0 = arith.constant 0 : i32
    return %c0_i32, %arg0 : i32, i32
  }
}

module attributes {stable_mosaic.version = 11 : i64} {
  func.func @_matmul_act_kernel(%arg0: i32, %arg1: memref<8x64xbf16, #tpu.memory_space<vmem>>, %arg2: memref<64x128xbf16, #tpu.memory_space<vmem>>, %arg3: memref<8x128xbf16, #tpu.memory_space<vmem>>) attributes {dimension_semantics = [#tpu.dimension_semantics<parallel>], iteration_bounds = array<i64: 1>, scalar_prefetch = 0 : i64, scratch_operands = 0 : i64, tpu.core_type = #tpu.core_type<tc>, window_params = [{pipeline_mode = #tpu.pipeline_mode<synchronous>, transform_indices = @transform_0, window_bounds = array<i64: 8, 64>}, {transform_indices = @transform_1, window_bounds = array<i64: 64, 128>}, {transform_indices = @transform_2, window_bounds = array<i64: 8, 128>}]} {
    %c0 = arith.constant 0 : index
    %c0_0 = arith.constant 0 : index
    %0 = vector.load %arg1[%c0, %c0_0] : memref<8x64xbf16, #tpu.memory_space<vmem>>, vector<8x64xbf16>
    %c0_1 = arith.constant 0 : index
    %c0_2 = arith.constant 0 : index
    %1 = vector.load %arg2[%c0_1, %c0_2] : memref<64x128xbf16, #tpu.memory_space<vmem>>, vector<64x128xbf16>
    %cst = arith.constant dense<0.000000e+00> : vector<8x128xf32>
    %2 = tpu.matmul %0, %1, %cst {dimension_numbers = #tpu.dot_dimension_numbers<[1], [0], [0], [1], [0, 0, 1, 1], [], []>} : vector<8x64xbf16>, vector<64x128xbf16>, vector<8x128xf32> -> vector<8x128xf32>
    %3 = arith.truncf %2 : vector<8x128xf32> to vector<8x128xbf16>
    %c0_3 = arith.constant 0 : index
    %c0_4 = arith.constant 0 : index
    %4 = vector.load %arg3[%c0_3, %c0_4] : memref<8x128xbf16, #tpu.memory_space<vmem>>, vector<8x128xbf16>
    tpu.vector_store %arg3[%c0_3, %c0_4], %3 {strides = array<i32>} : memref<8x128xbf16, #tpu.memory_space<vmem>>, vector<8x128xbf16>,
    return
  }
  func.func @transform_0(%arg0: i32) -> (i32, i32) {
    %c0_i32 = arith.constant 0 : i32
    %c0_i32_0 = arith.constant 0 : i32
    %c0_i32_1 = arith.constant 0 : i32
    return %c0_i32, %c0_i32_0 : i32, i32
  }
  func.func @transform_1(%arg0: i32) -> (i32, i32) {
    %c0_i32 = arith.constant 0 : i32
    %c0_i32_0 = arith.constant 0 : i32
    return %c0_i32, %arg0 : i32, i32
  }
  func.func @transform_2(%arg0: i32) -> (i32, i32) {
    %c0_i32 = arith.constant 0 : i32
    %c0_i32_0 = arith.constant 0 : i32
    return %c0_i32, %arg0 : i32, i32
  }
}

module attributes {stable_mosaic.version = 11 : i64} {
  func.func @_matmul_act_kernel(%arg0: i32, %arg1: memref<8x16xbf16, #tpu.memory_space<vmem>>, %arg2: memref<16x1024xbf16, #tpu.memory_space<vmem>>, %arg3: memref<8x1024xbf16, #tpu.memory_space<vmem>>) attributes {dimension_semantics = [#tpu.dimension_semantics<parallel>], iteration_bounds = array<i64: 1>, scalar_prefetch = 0 : i64, scratch_operands = 0 : i64, tpu.core_type = #tpu.core_type<tc>, window_params = [{pipeline_mode = #tpu.pipeline_mode<synchronous>, transform_indices = @transform_0, window_bounds = array<i64: 8, 16>}, {transform_indices = @transform_1, window_bounds = array<i64: 16, 1024>}, {transform_indices = @transform_2, window_bounds = array<i64: 8, 1024>}]} {
    %c0 = arith.constant 0 : index
    %c0_0 = arith.constant 0 : index
    %0 = vector.load %arg1[%c0, %c0_0] : memref<8x16xbf16, #tpu.memory_space<vmem>>, vector<8x16xbf16>
    %c0_1 = arith.constant 0 : index
    %c0_2 = arith.constant 0 : index
    %1 = vector.load %arg2[%c0_1, %c0_2] : memref<16x1024xbf16, #tpu.memory_space<vmem>>, vector<16x1024xbf16>
    %cst = arith.constant dense<0.000000e+00> : vector<8x1024xf32>
    %2 = tpu.matmul %0, %1, %cst {dimension_numbers = #tpu.dot_dimension_numbers<[1], [0], [0], [1], [0, 0, 1, 1], [], []>} : vector<8x16xbf16>, vector<16x1024xbf16>, vector<8x1024xf32> -> vector<8x1024xf32>
    %3 = arith.truncf %2 : vector<8x1024xf32> to vector<8x1024xbf16>
    %c0_3 = arith.constant 0 : index
    %c0_4 = arith.constant 0 : index
    %4 = vector.load %arg3[%c0_3, %c0_4] : memref<8x1024xbf16, #tpu.memory_space<vmem>>, vector<8x1024xbf16>
    tpu.vector_store %arg3[%c0_3, %c0_4], %3 {strides = array<i32>} : memref<8x1024xbf16, #tpu.memory_space<vmem>>, vector<8x1024xbf16>,
    return
  }
  func.func @transform_0(%arg0: i32) -> (i32, i32) {
    %c0_i32 = arith.constant 0 : i32
    %c0_i32_0 = arith.constant 0 : i32
    %c0_i32_1 = arith.constant 0 : i32
    return %c0_i32, %c0_i32_0 : i32, i32
  }
  func.func @transform_1(%arg0: i32) -> (i32, i32) {
    %c0_i32 = arith.constant 0 : i32
    %c0_i32_0 = arith.constant 0 : i32
    return %c0_i32, %arg0 : i32, i32
  }
  func.func @transform_2(%arg0: i32) -> (i32, i32) {
    %c0_i32 = arith.constant 0 : i32
    %c0_i32_0 = arith.constant 0 : i32
    return %c0_i32, %arg0 : i32, i32
  }
}

module attributes {stable_mosaic.version = 11 : i64} {
  func.func @_scale_bias_relu_kernel(%arg0: i32, %arg1: memref<64x128xbf16, #tpu.memory_space<vmem>>, %arg2: memref<64x1xf32, #tpu.memory_space<vmem>>, %arg3: memref<64x1xf32, #tpu.memory_space<vmem>>, %arg4: memref<64x128xbf16, #tpu.memory_space<vmem>>) attributes {dimension_semantics = [#tpu.dimension_semantics<parallel>], iteration_bounds = array<i64: 1>, scalar_prefetch = 0 : i64, scratch_operands = 0 : i64, tpu.core_type = #tpu.core_type<tc>, window_params = [{transform_indices = @transform_0, window_bounds = array<i64: 64, 128>}, {pipeline_mode = #tpu.pipeline_mode<synchronous>, transform_indices = @transform_1, window_bounds = array<i64: 64, 1>}, {pipeline_mode = #tpu.pipeline_mode<synchronous>, transform_indices = @transform_2, window_bounds = array<i64: 64, 1>}, {transform_indices = @transform_3, window_bounds = array<i64: 64, 128>}]} {
    %c0 = arith.constant 0 : index
    %c0_0 = arith.constant 0 : index
    %0 = vector.load %arg1[%c0, %c0_0] : memref<64x128xbf16, #tpu.memory_space<vmem>>, vector<64x128xbf16>
    %1 = arith.extf %0 : vector<64x128xbf16> to vector<64x128xf32>
    %c0_1 = arith.constant 0 : index
    %c0_2 = arith.constant 0 : index
    %2 = vector.load %arg2[%c0_1, %c0_2] : memref<64x1xf32, #tpu.memory_space<vmem>>, vector<64x1xf32>
    %3 = vector.broadcast %2 : vector<64x1xf32> to vector<64x128xf32>
    %4 = arith.mulf %1, %3 : vector<64x128xf32>
    %c0_3 = arith.constant 0 : index
    %c0_4 = arith.constant 0 : index
    %5 = vector.load %arg3[%c0_3, %c0_4] : memref<64x1xf32, #tpu.memory_space<vmem>>, vector<64x1xf32>
    %6 = vector.broadcast %5 : vector<64x1xf32> to vector<64x128xf32>
    %7 = arith.addf %4, %6 : vector<64x128xf32>
    %cst = arith.constant 0.000000e+00 : f32
    %8 = vector.broadcast %cst : f32 to vector<64x128xf32>
    %9 = arith.maximumf %7, %8 : vector<64x128xf32>
    %10 = arith.truncf %9 : vector<64x128xf32> to vector<64x128xbf16>
    %c0_5 = arith.constant 0 : index
    %c0_6 = arith.constant 0 : index
    %11 = vector.load %arg4[%c0_5, %c0_6] : memref<64x128xbf16, #tpu.memory_space<vmem>>, vector<64x128xbf16>
    tpu.vector_store %arg4[%c0_5, %c0_6], %10 {strides = array<i32>} : memref<64x128xbf16, #tpu.memory_space<vmem>>, vector<64x128xbf16>,
    return
  }
  func.func @transform_0(%arg0: i32) -> (i32, i32) {
    %c0_i32 = arith.constant 0 : i32
    %c0_i32_0 = arith.constant 0 : i32
    return %c0_i32, %arg0 : i32, i32
  }
  func.func @transform_1(%arg0: i32) -> (i32, i32) {
    %c0_i32 = arith.constant 0 : i32
    %c0_i32_0 = arith.constant 0 : i32
    %c0_i32_1 = arith.constant 0 : i32
    return %c0_i32, %c0_i32_0 : i32, i32
  }
  func.func @transform_2(%arg0: i32) -> (i32, i32) {
    %c0_i32 = arith.constant 0 : i32
    %c0_i32_0 = arith.constant 0 : i32
    %c0_i32_1 = arith.constant 0 : i32
    return %c0_i32, %c0_i32_0 : i32, i32
  }
  func.func @transform_3(%arg0: i32) -> (i32, i32) {
    %c0_i32 = arith.constant 0 : i32
    %c0_i32_0 = arith.constant 0 : i32
    return %c0_i32, %arg0 : i32, i32
  }
}

module attributes {stable_mosaic.version = 11 : i64} {
  func.func @_matmul_act_kernel(%arg0: i32, %arg1: memref<128x256xbf16, #tpu.memory_space<vmem>>, %arg2: memref<256x128xbf16, #tpu.memory_space<vmem>>, %arg3: memref<128x128xbf16, #tpu.memory_space<vmem>>) attributes {dimension_semantics = [#tpu.dimension_semantics<parallel>], iteration_bounds = array<i64: 1>, scalar_prefetch = 0 : i64, scratch_operands = 0 : i64, tpu.core_type = #tpu.core_type<tc>, window_params = [{pipeline_mode = #tpu.pipeline_mode<synchronous>, transform_indices = @transform_0, window_bounds = array<i64: 128, 256>}, {transform_indices = @transform_1, window_bounds = array<i64: 256, 128>}, {transform_indices = @transform_2, window_bounds = array<i64: 128, 128>}]} {
    %c0 = arith.constant 0 : index
    %c0_0 = arith.constant 0 : index
    %0 = vector.load %arg1[%c0, %c0_0] : memref<128x256xbf16, #tpu.memory_space<vmem>>, vector<128x256xbf16>
    %c0_1 = arith.constant 0 : index
    %c0_2 = arith.constant 0 : index
    %1 = vector.load %arg2[%c0_1, %c0_2] : memref<256x128xbf16, #tpu.memory_space<vmem>>, vector<256x128xbf16>
    %cst = arith.constant dense<0.000000e+00> : vector<128x128xf32>
    %2 = tpu.matmul %0, %1, %cst {dimension_numbers = #tpu.dot_dimension_numbers<[1], [0], [0], [1], [0, 0, 1, 1], [], []>} : vector<128x256xbf16>, vector<256x128xbf16>, vector<128x128xf32> -> vector<128x128xf32>
    %3 = arith.truncf %2 : vector<128x128xf32> to vector<128x128xbf16>
    %c0_3 = arith.constant 0 : index
    %c0_4 = arith.constant 0 : index
    %4 = vector.load %arg3[%c0_3, %c0_4] : memref<128x128xbf16, #tpu.memory_space<vmem>>, vector<128x128xbf16>
    tpu.vector_store %arg3[%c0_3, %c0_4], %3 {strides = array<i32>} : memref<128x128xbf16, #tpu.memory_space<vmem>>, vector<128x128xbf16>,
    return
  }
  func.func @transform_0(%arg0: i32) -> (i32, i32) {
    %c0_i32 = arith.constant 0 : i32
    %c0_i32_0 = arith.constant 0 : i32
    %c0_i32_1 = arith.constant 0 : i32
    return %c0_i32, %c0_i32_0 : i32, i32
  }
  func.func @transform_1(%arg0: i32) -> (i32, i32) {
    %c0_i32 = arith.constant 0 : i32
    %c0_i32_0 = arith.constant 0 : i32
    return %c0_i32, %arg0 : i32, i32
  }
  func.func @transform_2(%arg0: i32) -> (i32, i32) {
    %c0_i32 = arith.constant 0 : i32
    %c0_i32_0 = arith.constant 0 : i32
    return %c0_i32, %arg0 : i32, i32
  }
}

module attributes {stable_mosaic.version = 11 : i64} {
  func.func @_scale_bias_relu_kernel(%arg0: i32, %arg1: memref<32x128xbf16, #tpu.memory_space<vmem>>, %arg2: memref<32x1xf32, #tpu.memory_space<vmem>>, %arg3: memref<32x1xf32, #tpu.memory_space<vmem>>, %arg4: memref<32x128xbf16, #tpu.memory_space<vmem>>) attributes {dimension_semantics = [#tpu.dimension_semantics<parallel>], iteration_bounds = array<i64: 1>, scalar_prefetch = 0 : i64, scratch_operands = 0 : i64, tpu.core_type = #tpu.core_type<tc>, window_params = [{transform_indices = @transform_0, window_bounds = array<i64: 32, 128>}, {pipeline_mode = #tpu.pipeline_mode<synchronous>, transform_indices = @transform_1, window_bounds = array<i64: 32, 1>}, {pipeline_mode = #tpu.pipeline_mode<synchronous>, transform_indices = @transform_2, window_bounds = array<i64: 32, 1>}, {transform_indices = @transform_3, window_bounds = array<i64: 32, 128>}]} {
    %c0 = arith.constant 0 : index
    %c0_0 = arith.constant 0 : index
    %0 = vector.load %arg1[%c0, %c0_0] : memref<32x128xbf16, #tpu.memory_space<vmem>>, vector<32x128xbf16>
    %1 = arith.extf %0 : vector<32x128xbf16> to vector<32x128xf32>
    %c0_1 = arith.constant 0 : index
    %c0_2 = arith.constant 0 : index
    %2 = vector.load %arg2[%c0_1, %c0_2] : memref<32x1xf32, #tpu.memory_space<vmem>>, vector<32x1xf32>
    %3 = vector.broadcast %2 : vector<32x1xf32> to vector<32x128xf32>
    %4 = arith.mulf %1, %3 : vector<32x128xf32>
    %c0_3 = arith.constant 0 : index
    %c0_4 = arith.constant 0 : index
    %5 = vector.load %arg3[%c0_3, %c0_4] : memref<32x1xf32, #tpu.memory_space<vmem>>, vector<32x1xf32>
    %6 = vector.broadcast %5 : vector<32x1xf32> to vector<32x128xf32>
    %7 = arith.addf %4, %6 : vector<32x128xf32>
    %cst = arith.constant 0.000000e+00 : f32
    %8 = vector.broadcast %cst : f32 to vector<32x128xf32>
    %9 = arith.maximumf %7, %8 : vector<32x128xf32>
    %10 = arith.truncf %9 : vector<32x128xf32> to vector<32x128xbf16>
    %c0_5 = arith.constant 0 : index
    %c0_6 = arith.constant 0 : index
    %11 = vector.load %arg4[%c0_5, %c0_6] : memref<32x128xbf16, #tpu.memory_space<vmem>>, vector<32x128xbf16>
    tpu.vector_store %arg4[%c0_5, %c0_6], %10 {strides = array<i32>} : memref<32x128xbf16, #tpu.memory_space<vmem>>, vector<32x128xbf16>,
    return
  }
  func.func @transform_0(%arg0: i32) -> (i32, i32) {
    %c0_i32 = arith.constant 0 : i32
    %c0_i32_0 = arith.constant 0 : i32
    return %c0_i32, %arg0 : i32, i32
  }
  func.func @transform_1(%arg0: i32) -> (i32, i32) {
    %c0_i32 = arith.constant 0 : i32
    %c0_i32_0 = arith.constant 0 : i32
    %c0_i32_1 = arith.constant 0 : i32
    return %c0_i32, %c0_i32_0 : i32, i32
  }
  func.func @transform_2(%arg0: i32) -> (i32, i32) {
    %c0_i32 = arith.constant 0 : i32
    %c0_i32_0 = arith.constant 0 : i32
    %c0_i32_1 = arith.constant 0 : i32
    return %c0_i32, %c0_i32_0 : i32, i32
  }
  func.func @transform_3(%arg0: i32) -> (i32, i32) {
    %c0_i32 = arith.constant 0 : i32
    %c0_i32_0 = arith.constant 0 : i32
    return %c0_i32, %arg0 : i32, i32
  }
}

module attributes {stable_mosaic.version = 11 : i64} {
  func.func @_matmul_act_kernel(%arg0: i32, %arg1: memref<64x128xbf16, #tpu.memory_space<vmem>>, %arg2: memref<128x256xbf16, #tpu.memory_space<vmem>>, %arg3: memref<64x256xbf16, #tpu.memory_space<vmem>>) attributes {dimension_semantics = [#tpu.dimension_semantics<parallel>], iteration_bounds = array<i64: 1>, scalar_prefetch = 0 : i64, scratch_operands = 0 : i64, tpu.core_type = #tpu.core_type<tc>, window_params = [{pipeline_mode = #tpu.pipeline_mode<synchronous>, transform_indices = @transform_0, window_bounds = array<i64: 64, 128>}, {transform_indices = @transform_1, window_bounds = array<i64: 128, 256>}, {transform_indices = @transform_2, window_bounds = array<i64: 64, 256>}]} {
    %c0 = arith.constant 0 : index
    %c0_0 = arith.constant 0 : index
    %0 = vector.load %arg1[%c0, %c0_0] : memref<64x128xbf16, #tpu.memory_space<vmem>>, vector<64x128xbf16>
    %c0_1 = arith.constant 0 : index
    %c0_2 = arith.constant 0 : index
    %1 = vector.load %arg2[%c0_1, %c0_2] : memref<128x256xbf16, #tpu.memory_space<vmem>>, vector<128x256xbf16>
    %cst = arith.constant dense<0.000000e+00> : vector<64x256xf32>
    %2 = tpu.matmul %0, %1, %cst {dimension_numbers = #tpu.dot_dimension_numbers<[1], [0], [0], [1], [0, 0, 1, 1], [], []>} : vector<64x128xbf16>, vector<128x256xbf16>, vector<64x256xf32> -> vector<64x256xf32>
    %3 = arith.truncf %2 : vector<64x256xf32> to vector<64x256xbf16>
    %c0_3 = arith.constant 0 : index
    %c0_4 = arith.constant 0 : index
    %4 = vector.load %arg3[%c0_3, %c0_4] : memref<64x256xbf16, #tpu.memory_space<vmem>>, vector<64x256xbf16>
    tpu.vector_store %arg3[%c0_3, %c0_4], %3 {strides = array<i32>} : memref<64x256xbf16, #tpu.memory_space<vmem>>, vector<64x256xbf16>,
    return
  }
  func.func @transform_0(%arg0: i32) -> (i32, i32) {
    %c0_i32 = arith.constant 0 : i32
    %c0_i32_0 = arith.constant 0 : i32
    %c0_i32_1 = arith.constant 0 : i32
    return %c0_i32, %c0_i32_0 : i32, i32
  }
  func.func @transform_1(%arg0: i32) -> (i32, i32) {
    %c0_i32 = arith.constant 0 : i32
    %c0_i32_0 = arith.constant 0 : i32
    return %c0_i32, %arg0 : i32, i32
  }
  func.func @transform_2(%arg0: i32) -> (i32, i32) {
    %c0_i32 = arith.constant 0 : i32
    %c0_i32_0 = arith.constant 0 : i32
    return %c0_i32, %arg0 : i32, i32
  }
}

module attributes {stable_mosaic.version = 11 : i64} {
  func.func @_scale_bias_relu_kernel(%arg0: i32, %arg1: memref<16x512xbf16, #tpu.memory_space<vmem>>, %arg2: memref<16x1xf32, #tpu.memory_space<vmem>>, %arg3: memref<16x1xf32, #tpu.memory_space<vmem>>, %arg4: memref<16x512xbf16, #tpu.memory_space<vmem>>) attributes {dimension_semantics = [#tpu.dimension_semantics<parallel>], iteration_bounds = array<i64: 1>, scalar_prefetch = 0 : i64, scratch_operands = 0 : i64, tpu.core_type = #tpu.core_type<tc>, window_params = [{transform_indices = @transform_0, window_bounds = array<i64: 16, 512>}, {pipeline_mode = #tpu.pipeline_mode<synchronous>, transform_indices = @transform_1, window_bounds = array<i64: 16, 1>}, {pipeline_mode = #tpu.pipeline_mode<synchronous>, transform_indices = @transform_2, window_bounds = array<i64: 16, 1>}, {transform_indices = @transform_3, window_bounds = array<i64: 16, 512>}]} {
    %c0 = arith.constant 0 : index
    %c0_0 = arith.constant 0 : index
    %0 = vector.load %arg1[%c0, %c0_0] : memref<16x512xbf16, #tpu.memory_space<vmem>>, vector<16x512xbf16>
    %1 = arith.extf %0 : vector<16x512xbf16> to vector<16x512xf32>
    %c0_1 = arith.constant 0 : index
    %c0_2 = arith.constant 0 : index
    %2 = vector.load %arg2[%c0_1, %c0_2] : memref<16x1xf32, #tpu.memory_space<vmem>>, vector<16x1xf32>
    %3 = vector.broadcast %2 : vector<16x1xf32> to vector<16x512xf32>
    %4 = arith.mulf %1, %3 : vector<16x512xf32>
    %c0_3 = arith.constant 0 : index
    %c0_4 = arith.constant 0 : index
    %5 = vector.load %arg3[%c0_3, %c0_4] : memref<16x1xf32, #tpu.memory_space<vmem>>, vector<16x1xf32>
    %6 = vector.broadcast %5 : vector<16x1xf32> to vector<16x512xf32>
    %7 = arith.addf %4, %6 : vector<16x512xf32>
    %cst = arith.constant 0.000000e+00 : f32
    %8 = vector.broadcast %cst : f32 to vector<16x512xf32>
    %9 = arith.maximumf %7, %8 : vector<16x512xf32>
    %10 = arith.truncf %9 : vector<16x512xf32> to vector<16x512xbf16>
    %c0_5 = arith.constant 0 : index
    %c0_6 = arith.constant 0 : index
    %11 = vector.load %arg4[%c0_5, %c0_6] : memref<16x512xbf16, #tpu.memory_space<vmem>>, vector<16x512xbf16>
    tpu.vector_store %arg4[%c0_5, %c0_6], %10 {strides = array<i32>} : memref<16x512xbf16, #tpu.memory_space<vmem>>, vector<16x512xbf16>,
    return
  }
  func.func @transform_0(%arg0: i32) -> (i32, i32) {
    %c0_i32 = arith.constant 0 : i32
    %c0_i32_0 = arith.constant 0 : i32
    return %c0_i32, %arg0 : i32, i32
  }
  func.func @transform_1(%arg0: i32) -> (i32, i32) {
    %c0_i32 = arith.constant 0 : i32
    %c0_i32_0 = arith.constant 0 : i32
    %c0_i32_1 = arith.constant 0 : i32
    return %c0_i32, %c0_i32_0 : i32, i32
  }
  func.func @transform_2(%arg0: i32) -> (i32, i32) {
    %c0_i32 = arith.constant 0 : i32
    %c0_i32_0 = arith.constant 0 : i32
    %c0_i32_1 = arith.constant 0 : i32
    return %c0_i32, %c0_i32_0 : i32, i32
  }
  func.func @transform_3(%arg0: i32) -> (i32, i32) {
    %c0_i32 = arith.constant 0 : i32
    %c0_i32_0 = arith.constant 0 : i32
    return %c0_i32, %arg0 : i32, i32
  }
}

module attributes {stable_mosaic.version = 11 : i64} {
  func.func @_matmul_act_kernel(%arg0: i32, %arg1: memref<32x64xbf16, #tpu.memory_space<vmem>>, %arg2: memref<64x640xbf16, #tpu.memory_space<vmem>>, %arg3: memref<32x640xbf16, #tpu.memory_space<vmem>>) attributes {dimension_semantics = [#tpu.dimension_semantics<parallel>], iteration_bounds = array<i64: 1>, scalar_prefetch = 0 : i64, scratch_operands = 0 : i64, tpu.core_type = #tpu.core_type<tc>, window_params = [{pipeline_mode = #tpu.pipeline_mode<synchronous>, transform_indices = @transform_0, window_bounds = array<i64: 32, 64>}, {transform_indices = @transform_1, window_bounds = array<i64: 64, 640>}, {transform_indices = @transform_2, window_bounds = array<i64: 32, 640>}]} {
    %c0 = arith.constant 0 : index
    %c0_0 = arith.constant 0 : index
    %0 = vector.load %arg1[%c0, %c0_0] : memref<32x64xbf16, #tpu.memory_space<vmem>>, vector<32x64xbf16>
    %c0_1 = arith.constant 0 : index
    %c0_2 = arith.constant 0 : index
    %1 = vector.load %arg2[%c0_1, %c0_2] : memref<64x640xbf16, #tpu.memory_space<vmem>>, vector<64x640xbf16>
    %cst = arith.constant dense<0.000000e+00> : vector<32x640xf32>
    %2 = tpu.matmul %0, %1, %cst {dimension_numbers = #tpu.dot_dimension_numbers<[1], [0], [0], [1], [0, 0, 1, 1], [], []>} : vector<32x64xbf16>, vector<64x640xbf16>, vector<32x640xf32> -> vector<32x640xf32>
    %3 = arith.truncf %2 : vector<32x640xf32> to vector<32x640xbf16>
    %c0_3 = arith.constant 0 : index
    %c0_4 = arith.constant 0 : index
    %4 = vector.load %arg3[%c0_3, %c0_4] : memref<32x640xbf16, #tpu.memory_space<vmem>>, vector<32x640xbf16>
    tpu.vector_store %arg3[%c0_3, %c0_4], %3 {strides = array<i32>} : memref<32x640xbf16, #tpu.memory_space<vmem>>, vector<32x640xbf16>,
    return
  }
  func.func @transform_0(%arg0: i32) -> (i32, i32) {
    %c0_i32 = arith.constant 0 : i32
    %c0_i32_0 = arith.constant 0 : i32
    %c0_i32_1 = arith.constant 0 : i32
    return %c0_i32, %c0_i32_0 : i32, i32
  }
  func.func @transform_1(%arg0: i32) -> (i32, i32) {
    %c0_i32 = arith.constant 0 : i32
    %c0_i32_0 = arith.constant 0 : i32
    return %c0_i32, %arg0 : i32, i32
  }
  func.func @transform_2(%arg0: i32) -> (i32, i32) {
    %c0_i32 = arith.constant 0 : i32
    %c0_i32_0 = arith.constant 0 : i32
    return %c0_i32, %arg0 : i32, i32
  }
}

module attributes {stable_mosaic.version = 11 : i64} {
  func.func @_scale_bias_relu_kernel(%arg0: i32, %arg1: memref<8x1024xbf16, #tpu.memory_space<vmem>>, %arg2: memref<8x1xf32, #tpu.memory_space<vmem>>, %arg3: memref<8x1xf32, #tpu.memory_space<vmem>>, %arg4: memref<8x1024xbf16, #tpu.memory_space<vmem>>) attributes {dimension_semantics = [#tpu.dimension_semantics<parallel>], iteration_bounds = array<i64: 2>, scalar_prefetch = 0 : i64, scratch_operands = 0 : i64, tpu.core_type = #tpu.core_type<tc>, window_params = [{transform_indices = @transform_0, window_bounds = array<i64: 8, 1024>}, {pipeline_mode = #tpu.pipeline_mode<synchronous>, transform_indices = @transform_1, window_bounds = array<i64: 8, 1>}, {pipeline_mode = #tpu.pipeline_mode<synchronous>, transform_indices = @transform_2, window_bounds = array<i64: 8, 1>}, {transform_indices = @transform_3, window_bounds = array<i64: 8, 1024>}]} {
    %c0 = arith.constant 0 : index
    %c0_0 = arith.constant 0 : index
    %0 = vector.load %arg1[%c0, %c0_0] : memref<8x1024xbf16, #tpu.memory_space<vmem>>, vector<8x1024xbf16>
    %1 = arith.extf %0 : vector<8x1024xbf16> to vector<8x1024xf32>
    %c0_1 = arith.constant 0 : index
    %c0_2 = arith.constant 0 : index
    %2 = vector.load %arg2[%c0_1, %c0_2] : memref<8x1xf32, #tpu.memory_space<vmem>>, vector<8x1xf32>
    %3 = vector.broadcast %2 : vector<8x1xf32> to vector<8x1024xf32>
    %4 = arith.mulf %1, %3 : vector<8x1024xf32>
    %c0_3 = arith.constant 0 : index
    %c0_4 = arith.constant 0 : index
    %5 = vector.load %arg3[%c0_3, %c0_4] : memref<8x1xf32, #tpu.memory_space<vmem>>, vector<8x1xf32>
    %6 = vector.broadcast %5 : vector<8x1xf32> to vector<8x1024xf32>
    %7 = arith.addf %4, %6 : vector<8x1024xf32>
    %cst = arith.constant 0.000000e+00 : f32
    %8 = vector.broadcast %cst : f32 to vector<8x1024xf32>
    %9 = arith.maximumf %7, %8 : vector<8x1024xf32>
    %10 = arith.truncf %9 : vector<8x1024xf32> to vector<8x1024xbf16>
    %c0_5 = arith.constant 0 : index
    %c0_6 = arith.constant 0 : index
    %11 = vector.load %arg4[%c0_5, %c0_6] : memref<8x1024xbf16, #tpu.memory_space<vmem>>, vector<8x1024xbf16>
    tpu.vector_store %arg4[%c0_5, %c0_6], %10 {strides = array<i32>} : memref<8x1024xbf16, #tpu.memory_space<vmem>>, vector<8x1024xbf16>,
    return
  }
  func.func @transform_0(%arg0: i32) -> (i32, i32) {
    %c0_i32 = arith.constant 0 : i32
    %c0_i32_0 = arith.constant 0 : i32
    return %c0_i32, %arg0 : i32, i32
  }
  func.func @transform_1(%arg0: i32) -> (i32, i32) {
    %c0_i32 = arith.constant 0 : i32
    %c0_i32_0 = arith.constant 0 : i32
    %c0_i32_1 = arith.constant 0 : i32
    return %c0_i32, %c0_i32_0 : i32, i32
  }
  func.func @transform_2(%arg0: i32) -> (i32, i32) {
    %c0_i32 = arith.constant 0 : i32
    %c0_i32_0 = arith.constant 0 : i32
    %c0_i32_1 = arith.constant 0 : i32
    return %c0_i32, %c0_i32_0 : i32, i32
  }
  func.func @transform_3(%arg0: i32) -> (i32, i32) {
    %c0_i32 = arith.constant 0 : i32
    %c0_i32_0 = arith.constant 0 : i32
    return %c0_i32, %arg0 : i32, i32
  }
}

module attributes {stable_mosaic.version = 11 : i64} {
  func.func @_matmul_act_kernel(%arg0: i32, %arg1: memref<16x32xbf16, #tpu.memory_space<vmem>>, %arg2: memref<32x1152xbf16, #tpu.memory_space<vmem>>, %arg3: memref<16x1152xf32, #tpu.memory_space<vmem>>) attributes {dimension_semantics = [#tpu.dimension_semantics<parallel>], iteration_bounds = array<i64: 2>, scalar_prefetch = 0 : i64, scratch_operands = 0 : i64, tpu.core_type = #tpu.core_type<tc>, window_params = [{pipeline_mode = #tpu.pipeline_mode<synchronous>, transform_indices = @transform_0, window_bounds = array<i64: 16, 32>}, {transform_indices = @transform_1, window_bounds = array<i64: 32, 1152>}, {transform_indices = @transform_2, window_bounds = array<i64: 16, 1152>}]} {
    %c0 = arith.constant 0 : index
    %c0_0 = arith.constant 0 : index
    %0 = vector.load %arg1[%c0, %c0_0] : memref<16x32xbf16, #tpu.memory_space<vmem>>, vector<16x32xbf16>
    %c0_1 = arith.constant 0 : index
    %c0_2 = arith.constant 0 : index
    %1 = vector.load %arg2[%c0_1, %c0_2] : memref<32x1152xbf16, #tpu.memory_space<vmem>>, vector<32x1152xbf16>
    %cst = arith.constant dense<0.000000e+00> : vector<16x1152xf32>
    %2 = tpu.matmul %0, %1, %cst {dimension_numbers = #tpu.dot_dimension_numbers<[1], [0], [0], [1], [0, 0, 1, 1], [], []>} : vector<16x32xbf16>, vector<32x1152xbf16>, vector<16x1152xf32> -> vector<16x1152xf32>
    %3 = math.tanh %2 : vector<16x1152xf32>
    %c0_3 = arith.constant 0 : index
    %c0_4 = arith.constant 0 : index
    %4 = vector.load %arg3[%c0_3, %c0_4] : memref<16x1152xf32, #tpu.memory_space<vmem>>, vector<16x1152xf32>
    tpu.vector_store %arg3[%c0_3, %c0_4], %3 {strides = array<i32>} : memref<16x1152xf32, #tpu.memory_space<vmem>>, vector<16x1152xf32>,
    return
  }
  func.func @transform_0(%arg0: i32) -> (i32, i32) {
    %c0_i32 = arith.constant 0 : i32
    %c0_i32_0 = arith.constant 0 : i32
    %c0_i32_1 = arith.constant 0 : i32
    return %c0_i32, %c0_i32_0 : i32, i32
  }
  func.func @transform_1(%arg0: i32) -> (i32, i32) {
    %c0_i32 = arith.constant 0 : i32
    %c0_i32_0 = arith.constant 0 : i32
    return %c0_i32, %arg0 : i32, i32
  }
  func.func @transform_2(%arg0: i32) -> (i32, i32) {
    %c0_i32 = arith.constant 0 : i32
    %c0_i32_0 = arith.constant 0 : i32
    return %c0_i32, %arg0 : i32, i32
  }
}

</mosaic_0001>

<bundles_post_ra>
// kernel: generator_forward.14
= control target key start
LH: loop header
LB: loop body
LE: loop exit
PB: predicated region body
PF: predicated region fallthrough
CT: control target
= control target key end

     0   :  { %s835_s9 = smov 0   ;;  %s837_s10 = smov 0   ;;  %s1006_s0 = inlined_call_operand.vmem [shape: bf16[8,64], index: 0, kind: input, shape index: {}]   ;;  %s1007_s1 = inlined_call_operand.vmem [shape: bf16[64,2048], index: 1, kind: input, shape index: {}]   ;;  %s1008_s2 = inlined_call_operand.vmem [shape: bf16[8,2048], index: 2, kind: output, shape index: {}]  }
   0x1   :  { %s839_s11 = smov 0  }
   0x2 LB: > { %s712_s12 = sadd.s32 4294967295, %s817_s11   ;;  %s852_s13 = sadd.s32 1, %s817_s11   ;;  %s817_s11 = sphi %s839_s11, %s1011_s11   ;;  %s813_s10 = sphi %s837_s10, %s1010_s10   ;;  %s809_s9 = sphi %s835_s9, %s1009_s9  }
   0x3   : > { %s37_s14 = ssub.s32 %s817_s11, %s852_s13  ;;  %s40_s15 = sadd.s32 1, %s813_s10 }
   0x4   : > { %p38_p0 = scmp.eq.s32.totalorder %s37_s14, 0  ;;  %p47_p1 = scmp.ne.s32.totalorder %s813_s10, %s809_s9 }
   0x5   : > { %p48_p2 = scmp.eq.s32.totalorder %s817_s11, 0  ;;  %p715_p4 = scmp.ge.s32.totalorder %s817_s11, 2 }
   0x6   : > { %s861_s16 = scalar_select %p38_p0, %s813_s10, %s40_s15  }
   0x7   : > { %p49_p3 = por %p48_p2, %p47_p1  ;;  %102 = sbr.rel (%p715_p4) target bundleno = 34 (0x22), region = 20 }
   0xe   : > { %105 = sbr.rel (!%p49_p3) target bundleno = 34 (0x22), region = 24  ;;  %s107_s17 = sand.u32 (%p49_p3), 1, %s813_s10  }
   0xf   : > { %s765_s18 = sshll.u32 (%p49_p3), %s817_s11, 5  ;;  %s716_s19 = sshll.u32 (%p49_p3), %s107_s17, 8 }
  0x10   : > { %s869_s22 = scalar_lea.vmem (%p49_p3), %s1007_s1, %s765_s18  ;;  %s874_s23 = scalar_lea.vmem (%p49_p3), [#allocation2], %s716_s19 }
  0x11   : > { %v125_v0 = vld [vmem:[%s869_s22] sm:$0xff] (%p49_p3)  ;;  %v127_v1 = vld [vmem:[%s869_s22 + $0x8] sm:$0xff] (%p49_p3)  ;;  %v129_v2 = vld [vmem:[%s869_s22 + $0x10] sm:$0xff] (%p49_p3) }
  0x12   : > { %126 = vst [vmem:[%s874_s23] sm:$0xff] (%p49_p3), %v125_v0  ;;  %128 = vst [vmem:[%s874_s23 + $0x8] sm:$0xff] (%p49_p3), %v127_v1  ;;  %v131_v3 = vld [vmem:[%s869_s22 + $0x18] sm:$0xff] (%p49_p3)  ;;  %v133_v4 = vld [vmem:[%s869_s22 + $0x40] sm:$0xff] (%p49_p3) }
  0x13   : > { %130 = vst [vmem:[%s874_s23 + $0x10] sm:$0xff] (%p49_p3), %v129_v2  ;;  %v135_v5 = vld [vmem:[%s869_s22 + $0x48] sm:$0xff] (%p49_p3)  ;;  %132 = vst [vmem:[%s874_s23 + $0x18] sm:$0xff] (%p49_p3), %v131_v3  ;;  %v137_v6 = vld [vmem:[%s869_s22 + $0x50] sm:$0xff] (%p49_p3) }
  0x14   : > { %134 = vst [vmem:[%s874_s23 + $0x20] sm:$0xff] (%p49_p3), %v133_v4  ;;  %136 = vst [vmem:[%s874_s23 + $0x28] sm:$0xff] (%p49_p3), %v135_v5  ;;  %v139_v7 = vld [vmem:[%s869_s22 + $0x58] sm:$0xff] (%p49_p3)  ;;  %v141_v8 = vld [vmem:[%s869_s22 + $0x80] sm:$0xff] (%p49_p3) }
  0x15   : > { %138 = vst [vmem:[%s874_s23 + $0x30] sm:$0xff] %v137_v6  ;;  %140 = vst [vmem:[%s874_s23 + $0x38] sm:$0xff] %v139_v7  ;;  %v143_v9 = vld [vmem:[%s869_s22 + $0x88] sm:$0xff]  ;;  %v145_v10 = vld [vmem:[%s869_s22 + $0x90] sm:$0xff] }
  0x16   : > { %142 = vst [vmem:[%s874_s23 + $0x40] sm:$0xff] %v141_v8  ;;  %v147_v11 = vld [vmem:[%s869_s22 + $0x98] sm:$0xff]  ;;  %144 = vst [vmem:[%s874_s23 + $0x48] sm:$0xff] %v143_v9  ;;  %v149_v12 = vld [vmem:[%s869_s22 + $0xc0] sm:$0xff] }
  0x17   : > { %146 = vst [vmem:[%s874_s23 + $0x50] sm:$0xff] %v145_v10  ;;  %148 = vst [vmem:[%s874_s23 + $0x58] sm:$0xff] %v147_v11  ;;  %v151_v13 = vld [vmem:[%s869_s22 + $0xc8] sm:$0xff]  ;;  %v153_v14 = vld [vmem:[%s869_s22 + $0xd0] sm:$0xff] }
  0x18   : > { %150 = vst [vmem:[%s874_s23 + $0x60] sm:$0xff] %v149_v12  ;;  %152 = vst [vmem:[%s874_s23 + $0x68] sm:$0xff] %v151_v13  ;;  %v155_v15 = vld [vmem:[%s869_s22 + $0xd8] sm:$0xff]  ;;  %v157_v16 = vld [vmem:[%s869_s22 + $0x100] sm:$0xff] }
  0x19   : > { %154 = vst [vmem:[%s874_s23 + $0x70] sm:$0xff] %v153_v14  ;;  %v159_v17 = vld [vmem:[%s869_s22 + $0x108] sm:$0xff]  ;;  %156 = vst [vmem:[%s874_s23 + $0x78] sm:$0xff] %v155_v15  ;;  %v161_v18 = vld [vmem:[%s869_s22 + $0x110] sm:$0xff] }
  0x1a   : > { %158 = vst [vmem:[%s874_s23 + $0x80] sm:$0xff] %v157_v16  ;;  %160 = vst [vmem:[%s874_s23 + $0x88] sm:$0xff] %v159_v17  ;;  %v163_v19 = vld [vmem:[%s869_s22 + $0x118] sm:$0xff]  ;;  %v165_v20 = vld [vmem:[%s869_s22 + $0x140] sm:$0xff] }
  0x1b   : > { %162 = vst [vmem:[%s874_s23 + $0x90] sm:$0xff] %v161_v18  ;;  %164 = vst [vmem:[%s874_s23 + $0x98] sm:$0xff] %v163_v19  ;;  %v167_v21 = vld [vmem:[%s869_s22 + $0x148] sm:$0xff]  ;;  %v169_v22 = vld [vmem:[%s869_s22 + $0x150] sm:$0xff] }
  0x1c   : > { %166 = vst [vmem:[%s874_s23 + $0xa0] sm:$0xff] %v165_v20  ;;  %v171_v23 = vld [vmem:[%s869_s22 + $0x158] sm:$0xff]  ;;  %168 = vst [vmem:[%s874_s23 + $0xa8] sm:$0xff] %v167_v21  ;;  %v173_v24 = vld [vmem:[%s869_s22 + $0x180] sm:$0xff] }
  0x1d   : > { %170 = vst [vmem:[%s874_s23 + $0xb0] sm:$0xff] %v169_v22  ;;  %172 = vst [vmem:[%s874_s23 + $0xb8] sm:$0xff] %v171_v23  ;;  %v175_v25 = vld [vmem:[%s869_s22 + $0x188] sm:$0xff]  ;;  %v177_v26 = vld [vmem:[%s869_s22 + $0x190] sm:$0xff] }
  0x1e   : > { %174 = vst [vmem:[%s874_s23 + $0xc0] sm:$0xff] %v173_v24  ;;  %176 = vst [vmem:[%s874_s23 + $0xc8] sm:$0xff] %v175_v25  ;;  %v179_v27 = vld [vmem:[%s869_s22 + $0x198] sm:$0xff]  ;;  %v181_v28 = vld [vmem:[%s869_s22 + $0x1c0] sm:$0xff] }
  0x1f   : > { %178 = vst [vmem:[%s874_s23 + $0xd0] sm:$0xff] %v177_v26  ;;  %v183_v29 = vld [vmem:[%s869_s22 + $0x1c8] sm:$0xff]  ;;  %180 = vst [vmem:[%s874_s23 + $0xd8] sm:$0xff] %v179_v27  ;;  %v185_v30 = vld [vmem:[%s869_s22 + $0x1d0] sm:$0xff] }
  0x20   : > { %182 = vst [vmem:[%s874_s23 + $0xe0] sm:$0xff] %v181_v28  ;;  %184 = vst [vmem:[%s874_s23 + $0xe8] sm:$0xff] %v183_v29  ;;  %v187_v31 = vld [vmem:[%s869_s22 + $0x1d8] sm:$0xff] }
  0x21   : > { %186 = vst [vmem:[%s874_s23 + $0xf0] sm:$0xff] %v185_v30  ;;  %188 = vst [vmem:[%s874_s23 + $0xf8] sm:$0xff] %v187_v31 }
  0x22 PF: > { %p719_p5 = scmp.ge.s32.totalorder %s817_s11, 1  ;;  %p193_p6 = scmp.lt.s32.totalorder %s817_s11, 3 }
  0x24   : > { %p194_p7 = pnand %p719_p5, %p193_p6 }
  0x25   : > { %s200_s24 = sand.u32 (!%p194_p7), 1, %s809_s9   ;;  %v819_v32 = vmov (!%p194_p7), 0   ;;  %v229_v11 = vld [vmem:[%s1006_s0] sm:$0xf] (!%p194_p7)  ;;  %vm422_vm0 = vcmask (!%p194_p7), 523264   ;;  %s721_s29 = sshll.u32 (!%p194_p7), %s712_s12, 3 }
  0x26   : > { %197 = sbr.rel (%p194_p7) target bundleno = 296 (0x128), region = 47  ;;  %s720_s25 = sshll.u32 (!%p194_p7), %s200_s24, 8  ;;  %458 = vmatprep.mubr.bf16.mxu0 (!%p194_p7), %v819_v32  ;;  %499 = vmatprep.mubr.bf16.mxu1 (!%p194_p7), %v819_v32 }
  0x27   : > { %s942_s26 = scalar_lea.vmem (!%p194_p7), [#allocation2], %s720_s25  ;;  %p223_p8 = scmp.lt.s32.totalorder (!%p194_p7), %s721_s29, 15 }
  0x28   : > { %v230_v33 = vld [vmem:[%s942_s26] sm:$0xff] (!%p194_p7)  ;;  %v231_v35 = vld [vmem:[%s942_s26 + $0x8] sm:$0xff] (!%p194_p7)  ;;  %v232_v63 = vld [vmem:[%s942_s26 + $0x10] sm:$0xff] (!%p194_p7) }
  0x29   : > { %v234_v34 = vld [vmem:[%s942_s26 + $0x20] sm:$0xff] (!%p194_p7)  ;;  %v235_v37 = vld [vmem:[%s942_s26 + $0x28] sm:$0xff] (!%p194_p7)  ;;  %v236_v0 = vld [vmem:[%s942_s26 + $0x30] sm:$0xff] (!%p194_p7) }
  0x2a   : > { %v724_v36 = vcombine.high (!%p194_p7), %v230_v33, %v234_v34  ;;  %v723_v38 = vcombine.low (!%p194_p7), %v230_v33, %v234_v34  ;;  %v238_v39 = vld [vmem:[%s942_s26 + $0x40] sm:$0xff] (!%p194_p7)  ;;  %v726_v41 = vcombine.high (!%p194_p7), %v231_v35, %v235_v37  ;;  %v725_v42 = vcombine.low (!%p194_p7), %v231_v35, %v235_v37  ;;  %v239_v44 = vld [vmem:[%s942_s26 + $0x48] sm:$0xff] (!%p194_p7)  ;;  %v233_v1 = vld [vmem:[%s942_s26 + $0x18] sm:$0xff] (!%p194_p7) }
  0x2b   : > { %v242_v40 = vld [vmem:[%s942_s26 + $0x60] sm:$0xff] (!%p194_p7)  ;;  %v243_v45 = vld [vmem:[%s942_s26 + $0x68] sm:$0xff] (!%p194_p7)  ;;  %v237_v2 = vld [vmem:[%s942_s26 + $0x38] sm:$0xff] (!%p194_p7)  ;;  %v728_v5 = vcombine.high (!%p194_p7), %v232_v63, %v236_v0  ;;  %v727_v12 = vcombine.low (!%p194_p7), %v232_v63, %v236_v0 }
  0x2c   : > { %v732_v43 = vcombine.high (!%p194_p7), %v238_v39, %v242_v40  ;;  %v246_v46 = vld [vmem:[%s942_s26 + $0x80] sm:$0xff] (!%p194_p7)  ;;  %426 = vmatprep.subr.bf16.mxu0 (!%p194_p7), %v724_v36  ;;  %v734_v47 = vcombine.high (!%p194_p7), %v239_v44, %v243_v45  ;;  %v247_v49 = vld [vmem:[%s942_s26 + $0x88] sm:$0xff] (!%p194_p7)  ;;  %467 = vmatprep.subr.bf16.mxu1 (!%p194_p7), %v726_v41  ;;  %v731_v51 = vcombine.low (!%p194_p7), %v238_v39, %v242_v40  ;;  %v240_v7 = vld [vmem:[%s942_s26 + $0x50] sm:$0xff] (!%p194_p7) }
  0x2d   : > { %v250_v48 = vld [vmem:[%s942_s26 + $0xa0] sm:$0xff]  ;;  %v251_v50 = vld [vmem:[%s942_s26 + $0xa8] sm:$0xff]  ;;  %427 = vmatpush1.bf16.msra.mxu0 %v723_v38  ;;  %468 = vmatpush1.bf16.msra.mxu1 %v725_v42  ;;  %v733_v52 = vcombine.low %v239_v44, %v243_v45  ;;  %v730_v6 = vcombine.high %v233_v1, %v237_v2  ;;  %v244_v8 = vld [vmem:[%s942_s26 + $0x70] sm:$0xff]  ;;  %v729_v13 = vcombine.low %v233_v1, %v237_v2  ;;  %s1013_s29 = smov (!%p223_p8, %s721_s29), 15 }
  0x2e   : > { %428 = vmatprep.subr.bf16.mxu0 %v732_v43  ;;  %v740_v53 = vcombine.high %v246_v46, %v250_v48  ;;  %469 = vmatprep.subr.bf16.mxu1 %v734_v47  ;;  %v742_v54 = vcombine.high %v247_v49, %v251_v50  ;;  %v254_v55 = vld [vmem:[%s942_s26 + $0xc0] sm:$0xff]  ;;  %v255_v57 = vld [vmem:[%s942_s26 + $0xc8] sm:$0xff]  ;;  %v739_v59 = vcombine.low %v246_v46, %v250_v48  ;;  %v241_v9 = vld [vmem:[%s942_s26 + $0x58] sm:$0xff]  ;;  %s722_s30 = sshll.u32 %s1013_s29, 2 }
  0x2f   : > { %v258_v56 = vld [vmem:[%s942_s26 + $0xe0] sm:$0xff]  ;;  %v259_v58 = vld [vmem:[%s942_s26 + $0xe8] sm:$0xff]  ;;  %v741_v60 = vcombine.low %v247_v49, %v251_v50  ;;  %v245_v10 = vld [vmem:[%s942_s26 + $0x78] sm:$0xff]  ;;  %v736_v14 = vcombine.high %v240_v7, %v244_v8  ;;  %v735_v20 = vcombine.low %v240_v7, %v244_v8  ;;  %s990_s5 = scalar_lea.vmem %s1008_s2, %s722_s30 }
  0x30   : > { %v748_v61 = vcombine.high %v254_v55, %v258_v56  ;;  %v750_v62 = vcombine.high %v255_v57, %v259_v58  ;;  %v747_v3 = vcombine.low %v254_v55, %v258_v56  ;;  %v749_v4 = vcombine.low %v255_v57, %v259_v58  ;;  %v248_v16 = vld [vmem:[%s942_s26 + $0x90] sm:$0xff]  ;;  %v249_v18 = vld [vmem:[%s942_s26 + $0x98] sm:$0xff] }
  0x31   : > { %429 = vmatpush1.bf16.msra.mxu0 %v731_v51  ;;  %470 = vmatpush1.bf16.msra.mxu1 %v733_v52  ;;  %v738_v15 = vcombine.high %v241_v9, %v245_v10  ;;  %v252_v17 = vld [vmem:[%s942_s26 + $0xb0] sm:$0xff]  ;;  %v253_v19 = vld [vmem:[%s942_s26 + $0xb8] sm:$0xff]  ;;  %v737_v21 = vcombine.low %v241_v9, %v245_v10 }
  0x32   : > { %430 = vmatprep.subr.bf16.mxu0 %v740_v53  ;;  %471 = vmatprep.subr.bf16.mxu1 %v742_v54  ;;  %v744_v22 = vcombine.high %v248_v16, %v252_v17  ;;  %v746_v23 = vcombine.high %v249_v18, %v253_v19  ;;  %v256_v24 = vld [vmem:[%s942_s26 + $0xd0] sm:$0xff]  ;;  %v257_v26 = vld [vmem:[%s942_s26 + $0xd8] sm:$0xff]  ;;  %v743_v28 = vcombine.low %v248_v16, %v252_v17 }
  0x33   : > { %v260_v25 = vld [vmem:[%s942_s26 + $0xf0] sm:$0xff]  ;;  %v261_v27 = vld [vmem:[%s942_s26 + $0xf8] sm:$0xff]  ;;  %v745_v29 = vcombine.low %v249_v18, %v253_v19 }
  0x34   : > { %v752_v30 = vcombine.high %v256_v24, %v260_v25  ;;  %v754_v31 = vcombine.high %v257_v26, %v261_v27  ;;  %v751_v33 = vcombine.low %v256_v24, %v260_v25  ;;  %v753_v34 = vcombine.low %v257_v26, %v261_v27 }
  0x35   : > { %431 = vmatpush1.bf16.msra.mxu0 %v739_v59  ;;  %472 = vmatpush1.bf16.msra.mxu1 %v741_v60 }
  0x36   : > { %432 = vmatprep.subr.bf16.mxu0 %v748_v61  ;;  %473 = vmatprep.subr.bf16.mxu1 %v750_v62 }
  0x39   : > { %433 = vmatpush1.bf16.msra.mxu0 %v747_v3  ;;  %474 = vmatpush1.bf16.msra.mxu1 %v749_v4 }
  0x3a   : > { %508 = vmatprep.subr.bf16.mxu0 %v728_v5  ;;  %549 = vmatprep.subr.bf16.mxu1 %v730_v6 }
  0x3c   : > { %755 = vmatmul.mubr.msk.bf16.vlgmr.msra.gmra.mrb[0].mxu0 %vm422_vm0, %v229_v11  ;;  %756 = vmatmul.mubr.msk.bf16.vlgmr.msra.gmra.mrb[0].mxu1 %vm422_vm0, %v229_v11 }
  0x3d   : > { %509 = vmatpush1.bf16.msra.mxu0 %v727_v12  ;;  %550 = vmatpush1.bf16.msra.mxu1 %v729_v13 }
  0x3e   : > { %510 = vmatprep.subr.bf16.mxu0 %v736_v14  ;;  %551 = vmatprep.subr.bf16.mxu1 %v738_v15 }
  0x3f   : > { %540 = vmatprep.mubr.bf16.mxu0 %v819_v32  ;;  %581 = vmatprep.mubr.bf16.mxu1 %v819_v32 }
  0x41   : > { %511 = vmatpush1.bf16.msra.mxu0 %v735_v20  ;;  %552 = vmatpush1.bf16.msra.mxu1 %v737_v21 }
  0x42   : > { %512 = vmatprep.subr.bf16.mxu0 %v744_v22  ;;  %553 = vmatprep.subr.bf16.mxu1 %v746_v23 }
  0x45   : > { %513 = vmatpush1.bf16.msra.mxu0 %v743_v28  ;;  %554 = vmatpush1.bf16.msra.mxu1 %v745_v29 }
  0x46   : > { %514 = vmatprep.subr.bf16.mxu0 %v752_v30  ;;  %555 = vmatprep.subr.bf16.mxu1 %v754_v31 }
  0x49   : > { %515 = vmatpush1.bf16.msra.mxu0 %v751_v33  ;;  %556 = vmatpush1.bf16.msra.mxu1 %v753_v34 }
  0x4c   : > { %757 = vmatmul.mubr.msk.bf16.vlgmr.msra.gmra.mrb[4].mxu0 %vm422_vm0, %v229_v11  ;;  %758 = vmatmul.mubr.msk.bf16.vlgmr.msra.gmra.mrb[4].mxu1 %vm422_vm0, %v229_v11 }
 0x10f   : > { %v460_v32 = vpop.f32.mrb[0].mxu0  ;;  %v501_v36 = vpop.f32.mrb[0].mxu1 }
 0x110   : > { %vm590_vm1 = vcmp.gt.f32.partialorder %v460_v32, 0.0  ;;  %v598_v35 = vmul.f32 0.2, %v460_v32  ;;  %v462_v37 = vpop.f32.mrb[1].mxu0  ;;  %vm592_vm2 = vcmp.gt.f32.partialorder %v501_v36, 0.0  ;;  %v503_v41 = vpop.f32.mrb[1].mxu1 }
 0x111   : > { %v600_v38 = vmul.f32 0.2, %v501_v36  ;;  %vm591_vm3 = vcmp.gt.f32.partialorder %v462_v37, 0.0  ;;  %v599_v39 = vmul.f32 0.2, %v462_v37  ;;  %v464_v42 = vpop.f32.mrb[2].mxu0 }
 0x112   : > { %v606_v40 = vsel %vm590_vm1, %v460_v32, %v598_v35  ;;  %vm593_vm4 = vcmp.gt.f32.partialorder %v503_v41, 0.0  ;;  %v601_v45 = vmul.f32 0.2, %v503_v41  ;;  %v505_v46 = vpop.f32.mrb[2].mxu1  ;;  %v465_v47 = vpop.f32.mrb[3].mxu0 }
 0x113   : > { %v608_v43 = vsel %vm592_vm2, %v501_v36, %v600_v38  ;;  %v607_v44 = vsel %vm591_vm3, %v462_v37, %v599_v39  ;;  %v506_v49 = vpop.f32.mrb[3].mxu1 }
 0x114   : > { %v766_v48 = vpack.c.bf16 %v607_v44, %v606_v40  ;;  %v609_v50 = vsel %vm593_vm4, %v503_v41, %v601_v45 }
 0x115   : > { %v767_v51 = vpack.c.bf16 %v609_v50, %v608_v43 }
 0x116   : > { %646 = vst [vmem:[%s990_s5] sm:$0xff] %v766_v48 }
 0x117   : > { %647 = vst [vmem:[%s990_s5 + $0x8] sm:$0xff] %v767_v51 }
 0x11f   : > { %v542_v52 = vpop.f32.mrb[4].mxu0  ;;  %v583_v54 = vpop.f32.mrb[4].mxu1 }
 0x120   : > { %vm594_vm5 = vcmp.gt.f32.partialorder %v542_v52, 0.0  ;;  %v602_v53 = vmul.f32 0.2, %v542_v52  ;;  %v544_v55 = vpop.f32.mrb[5].mxu0  ;;  %vm596_vm6 = vcmp.gt.f32.partialorder %v583_v54, 0.0  ;;  %v585_v59 = vpop.f32.mrb[5].mxu1 }
 0x121   : > { %v604_v56 = vmul.f32 0.2, %v583_v54  ;;  %vm595_vm7 = vcmp.gt.f32.partialorder %v544_v55, 0.0  ;;  %v603_v57 = vmul.f32 0.2, %v544_v55  ;;  %v546_v60 = vpop.f32.mrb[6].mxu0 }
 0x122   : > { %v610_v58 = vsel %vm594_vm5, %v542_v52, %v602_v53  ;;  %vm597_vm8 = vcmp.gt.f32.partialorder %v585_v59, 0.0  ;;  %v605_v63 = vmul.f32 0.2, %v585_v59  ;;  %v587_v0 = vpop.f32.mrb[6].mxu1  ;;  %v547_v1 = vpop.f32.mrb[7].mxu0 }
 0x123   : > { %v612_v61 = vsel %vm596_vm6, %v583_v54, %v604_v56  ;;  %v611_v62 = vsel %vm595_vm7, %v544_v55, %v603_v57  ;;  %v588_v3 = vpop.f32.mrb[7].mxu1 }
 0x124   : > { %v768_v2 = vpack.c.bf16 %v611_v62, %v610_v58  ;;  %v613_v4 = vsel %vm597_vm8, %v585_v59, %v605_v63 }
 0x125   : > { %v769_v5 = vpack.c.bf16 %v613_v4, %v612_v61 }
 0x126   : > { %648 = vst [vmem:[%s990_s5 + $0x10] sm:$0xff] %v768_v2 }
 0x127   : > { %649 = vst [vmem:[%s990_s5 + $0x18] sm:$0xff] %v769_v5 }
 0x128 PF: > { %p9_p9 = scmp.ge.s32.totalorder %s852_s13, 4   ;;  %s1009_s9 = smov %s813_s10 }
 0x129   : > { %s1010_s10 = smov %s861_s16  ;;  %s1011_s11 = smov %s852_s13 }
 0x12a   :  { %11 = sbr.rel (!%p9_p9) target bundleno = 2 (0x2), region = 86 }

// kernel: generator_forward.15
= control target key start
LH: loop header
LB: loop body
LE: loop exit
PB: predicated region body
PF: predicated region fallthrough
CT: control target
= control target key end

     0   :  { %v276_v1 = vmov 0   ;;  %vm109_vm0 = vcmask 523264   ;;  %s349_s1 = inlined_call_operand.vmem [shape: bf16[64,512], index: 1, kind: input, shape index: {}]   ;;  %s350_s0 = inlined_call_operand.vmem [shape: bf16[8,64], index: 0, kind: input, shape index: {}]   ;;  %s351_s2 = inlined_call_operand.vmem [shape: bf16[8,512], index: 2, kind: output, shape index: {}]  }
   0x1   :  { %v252_v0 = vld [vmem:[%s349_s1 + $0x4] ss:$16 sps:$4 sm:$0xff]   ;;  %145 = vmatprep.mubr.bf16.mxu0 %v276_v1  ;;  %186 = vmatprep.mubr.bf16.mxu1 %v276_v1  ;;  %v254_v2 = vld [vmem:[%s349_s1 + $0xc] ss:$16 sps:$4 sm:$0xff]   ;;  %v256_v3 = vld [vmem:[%s349_s1] ss:$16 sps:$4 sm:$0xff]  }
   0x2   :  { %113 = vmatprep.subr.bf16.mxu0 %v252_v0  ;;  %v257_v4 = vld [vmem:[%s349_s1 + $0x8] ss:$16 sps:$4 sm:$0xff]   ;;  %154 = vmatprep.subr.bf16.mxu1 %v254_v2  ;;  %v258_v5 = vld [vmem:[%s349_s1 + $0x24] ss:$16 sps:$4 sm:$0xff]   ;;  %v260_v6 = vld [vmem:[%s349_s1 + $0x2c] ss:$16 sps:$4 sm:$0xff]  }
   0x3   :  { %114 = vmatpush1.bf16.msra.mxu0 %v256_v3  ;;  %155 = vmatpush1.bf16.msra.mxu1 %v257_v4  ;;  %v262_v7 = vld [vmem:[%s349_s1 + $0x20] ss:$16 sps:$4 sm:$0xff]   ;;  %v263_v8 = vld [vmem:[%s349_s1 + $0x28] ss:$16 sps:$4 sm:$0xff]   ;;  %v264_v9 = vld [vmem:[%s349_s1 + $0x44] ss:$16 sps:$4 sm:$0xff]  }
   0x4   :  { %115 = vmatprep.subr.bf16.mxu0 %v258_v5  ;;  %156 = vmatprep.subr.bf16.mxu1 %v260_v6  ;;  %v266_v10 = vld [vmem:[%s349_s1 + $0x4c] ss:$16 sps:$4 sm:$0xff]   ;;  %v268_v11 = vld [vmem:[%s349_s1 + $0x40] ss:$16 sps:$4 sm:$0xff]   ;;  %v269_v12 = vld [vmem:[%s349_s1 + $0x48] ss:$16 sps:$4 sm:$0xff]  }
   0x5   :  { %v270_v13 = vld [vmem:[%s349_s1 + $0x64] ss:$16 sps:$4 sm:$0xff]   ;;  %v272_v14 = vld [vmem:[%s349_s1 + $0x6c] ss:$16 sps:$4 sm:$0xff]   ;;  %v274_v15 = vld [vmem:[%s349_s1 + $0x60] ss:$16 sps:$4 sm:$0xff]  }
   0x6   :  { %v275_v16 = vld [vmem:[%s349_s1 + $0x68] ss:$16 sps:$4 sm:$0xff]   ;;  %v12_v17 = vld [vmem:[%s350_s0] sm:$0xf] }
   0x7   :  { %116 = vmatpush1.bf16.msra.mxu0 %v262_v7  ;;  %157 = vmatpush1.bf16.msra.mxu1 %v263_v8 }
   0x8   :  { %117 = vmatprep.subr.bf16.mxu0 %v264_v9  ;;  %158 = vmatprep.subr.bf16.mxu1 %v266_v10 }
   0xb   :  { %118 = vmatpush1.bf16.msra.mxu0 %v268_v11  ;;  %159 = vmatpush1.bf16.msra.mxu1 %v269_v12 }
   0xc   :  { %119 = vmatprep.subr.bf16.mxu0 %v270_v13  ;;  %160 = vmatprep.subr.bf16.mxu1 %v272_v14 }
   0xf   :  { %120 = vmatpush1.bf16.msra.mxu0 %v274_v15  ;;  %161 = vmatpush1.bf16.msra.mxu1 %v275_v16 }
  0x12   :  { %245 = vmatmul.mubr.msk.bf16.vlgmr.msra.gmra.mrb[0].mxu0 %vm109_vm0, %v12_v17  ;;  %246 = vmatmul.mubr.msk.bf16.vlgmr.msra.gmra.mrb[0].mxu1 %vm109_vm0, %v12_v17 }
  0xe5   :  { %v147_v18 = vpop.f32.mrb[0].mxu0  ;;  %v188_v19 = vpop.f32.mrb[0].mxu1 }
  0xe6   :  { %vm195_vm1 = vcmp.gt.f32.partialorder %v147_v18, 0.0  ;;  %v199_v20 = vmul.f32 0.2, %v147_v18  ;;  %vm197_vm2 = vcmp.gt.f32.partialorder %v188_v19, 0.0  ;;  %v201_v21 = vmul.f32 0.2, %v188_v19 }
  0xe7   :  { %v149_v22 = vpop.f32.mrb[1].mxu0  ;;  %v190_v23 = vpop.f32.mrb[1].mxu1 }
  0xe8   :  { %v203_v24 = vsel %vm195_vm1, %v147_v18, %v199_v20  ;;  %vm196_vm3 = vcmp.gt.f32.partialorder %v149_v22, 0.0  ;;  %v200_v25 = vmul.f32 0.2, %v149_v22  ;;  %v151_v26 = vpop.f32.mrb[2].mxu0  ;;  %v192_v27 = vpop.f32.mrb[2].mxu1  ;;  %v205_v28 = vsel %vm197_vm2, %v188_v19, %v201_v21 }
  0xe9   :  { %vm198_vm4 = vcmp.gt.f32.partialorder %v190_v23, 0.0  ;;  %v202_v29 = vmul.f32 0.2, %v190_v23  ;;  %v152_v30 = vpop.f32.mrb[3].mxu0  ;;  %v193_v31 = vpop.f32.mrb[3].mxu1 }
  0xea   :  { %v204_v32 = vsel %vm196_vm3, %v149_v22, %v200_v25 }
  0xeb   :  { %v249_v33 = vpack.c.bf16 %v204_v32, %v203_v24  ;;  %v206_v34 = vsel %vm198_vm4, %v190_v23, %v202_v29 }
  0xec   :  { %v250_v35 = vpack.c.bf16 %v206_v34, %v205_v28 }
  0xed   :  { %223 = vst [vmem:[%s351_s2] sm:$0xff] %v249_v33 }
  0xee   :  { %224 = vst [vmem:[%s351_s2 + $0x8] sm:$0xff] %v250_v35 }

// kernel: generator_forward.16
= control target key start
LH: loop header
LB: loop body
LE: loop exit
PB: predicated region body
PF: predicated region fallthrough
CT: control target
= control target key end

     0   :  { %v126_v0 = vmov 0.0   ;;  %vm127_vm0 = vmmov 0   ;;  %vm45_vm1 = vcmask 523264   ;;  %s161_s1 = inlined_call_operand.vmem [shape: bf16[64,128], index: 1, kind: input, shape index: {}]   ;;  %s162_s0 = inlined_call_operand.vmem [shape: bf16[8,64], index: 0, kind: input, shape index: {}]   ;;  %s163_s2 = inlined_call_operand.vmem [shape: bf16[8,128], index: 2, kind: output, shape index: {}]  }
   0x1   :  { %108 = vmatprep.subr.bf16.mxu0 %v126_v0  ;;  %v122_v1 = vld [vmem:[%s161_s1] sm:$0xff]   ;;  %116 = vmatprep.mubr.msk.bf16.mxu0 %vm127_vm0, %v126_v0  ;;  %v123_v2 = vld [vmem:[%s161_s1 + $0x8] sm:$0xff]   ;;  %v124_v3 = vld [vmem:[%s161_s1 + $0x10] sm:$0xff]  }
   0x2   :  { %109 = vmatpush3.bf16.msra.mxu0 %v122_v1  ;;  %v125_v4 = vld [vmem:[%s161_s1 + $0x18] sm:$0xff]   ;;  %v12_v5 = vld [vmem:[%s162_s0] sm:$0xf] }
   0x3   :  { %110 = vmatprep.subr.bf16.mxu0 %v126_v0 }
   0x6   :  { %111 = vmatpush3.bf16.msra.mxu0 %v123_v2 }
   0x7   :  { %112 = vmatprep.subr.bf16.mxu0 %v126_v0 }
   0xa   :  { %113 = vmatpush3.bf16.msra.mxu0 %v124_v3 }
   0xb   :  { %114 = vmatprep.subr.bf16.mxu0 %v126_v0 }
   0xe   :  { %115 = vmatpush3.bf16.msra.mxu0 %v125_v4 }
  0x11   :  { %117 = vmatmul.mubr.msk.bf16.vlgmr.msra.gmra.mrb[0].mxu0 %vm45_vm1, %v12_v5 }
  0xe4   :  { %v83_v6 = vpop.f32.mrb[0].mxu0 }
  0xe5   :  { %vm89_vm2 = vcmp.gt.f32.partialorder %v83_v6, 0.0  ;;  %v90_v7 = vmul.f32 0.2, %v83_v6  ;;  %v118_v8 = vpop.f32.mrb[1].mxu0 }
  0xe6   :  { %v86_v9 = vpop.f32.mrb[2].mxu0 }
  0xe7   :  { %v91_v10 = vsel %vm89_vm2, %v83_v6, %v90_v7  ;;  %v119_v11 = vpop.f32.mrb[3].mxu0 }
  0xe8   :  { %v92_v12 = vpack.c.bf16 %v91_v10, %v91_v10 }
  0xea   :  { %93 = vst [vmem:[%s163_s2] sm:$0xf] %v92_v12 }

// kernel: generator_forward.18
= control target key start
LH: loop header
LB: loop body
LE: loop exit
PB: predicated region body
PF: predicated region fallthrough
CT: control target
= control target key end

     0   :  { %v123_v0 = vmov 0.0   ;;  %vm124_vm0 = vmmov 0   ;;  %vm45_vm1 = vcmask 523264   ;;  %s158_s1 = inlined_call_operand.vmem [shape: bf16[64,128], index: 1, kind: input, shape index: {}]   ;;  %s159_s0 = inlined_call_operand.vmem [shape: bf16[8,64], index: 0, kind: input, shape index: {}]   ;;  %s160_s2 = inlined_call_operand.vmem [shape: bf16[8,128], index: 2, kind: output, shape index: {}]  }
   0x1   :  { %105 = vmatprep.subr.bf16.mxu0 %v123_v0  ;;  %v119_v1 = vld [vmem:[%s158_s1] sm:$0xff]   ;;  %113 = vmatprep.mubr.msk.bf16.mxu0 %vm124_vm0, %v123_v0  ;;  %v120_v2 = vld [vmem:[%s158_s1 + $0x8] sm:$0xff]   ;;  %v121_v3 = vld [vmem:[%s158_s1 + $0x10] sm:$0xff]  }
   0x2   :  { %106 = vmatpush3.bf16.msra.mxu0 %v119_v1  ;;  %v122_v4 = vld [vmem:[%s158_s1 + $0x18] sm:$0xff]   ;;  %v12_v5 = vld [vmem:[%s159_s0] sm:$0xf] }
   0x3   :  { %107 = vmatprep.subr.bf16.mxu0 %v123_v0 }
   0x6   :  { %108 = vmatpush3.bf16.msra.mxu0 %v120_v2 }
   0x7   :  { %109 = vmatprep.subr.bf16.mxu0 %v123_v0 }
   0xa   :  { %110 = vmatpush3.bf16.msra.mxu0 %v121_v3 }
   0xb   :  { %111 = vmatprep.subr.bf16.mxu0 %v123_v0 }
   0xe   :  { %112 = vmatpush3.bf16.msra.mxu0 %v122_v4 }
  0x11   :  { %114 = vmatmul.mubr.msk.bf16.vlgmr.msra.gmra.mrb[0].mxu0 %vm45_vm1, %v12_v5 }
  0xe4   :  { %v83_v6 = vpop.f32.mrb[0].mxu0 }
  0xe5   :  { %v89_v7 = vpack.c.bf16 %v83_v6, %v83_v6  ;;  %v115_v8 = vpop.f32.mrb[1].mxu0 }
  0xe6   :  { %v86_v9 = vpop.f32.mrb[2].mxu0 }
  0xe7   :  { %90 = vst [vmem:[%s160_s2] sm:$0xf] %v89_v7  ;;  %v116_v10 = vpop.f32.mrb[3].mxu0 }

// kernel: generator_forward.19
= control target key start
LH: loop header
LB: loop body
LE: loop exit
PB: predicated region body
PF: predicated region fallthrough
CT: control target
= control target key end

     0   :  { %v290_v3 = vmov 0   ;;  %vm61_vm0 = vcmask 130048   ;;  %s345_s1 = inlined_call_operand.vmem [shape: bf16[16,1024], index: 1, kind: input, shape index: {}]   ;;  %s346_s0 = inlined_call_operand.vmem [shape: bf16[8,16], index: 0, kind: input, shape index: {}]   ;;  %s347_s2 = inlined_call_operand.vmem [shape: bf16[8,1024], index: 2, kind: output, shape index: {}]  }
   0x1   :  { %v13_v0 = vld [vmem:[%s345_s1] sm:$0xff]  ;;  %v14_v2 = vld [vmem:[%s345_s1 + $0x8] sm:$0xff]  ;;  %97 = vmatprep.mubr.bf16.mxu0 %v290_v3  ;;  %138 = vmatprep.mubr.bf16.mxu1 %v290_v3  ;;  %v15_v7 = vld [vmem:[%s345_s1 + $0x10] sm:$0xff] }
   0x2   :  { %v17_v1 = vld [vmem:[%s345_s1 + $0x20] sm:$0xff]  ;;  %v18_v5 = vld [vmem:[%s345_s1 + $0x28] sm:$0xff]  ;;  %v19_v10 = vld [vmem:[%s345_s1 + $0x30] sm:$0xff] }
   0x3   :  { %v270_v4 = vcombine.high %v13_v0, %v17_v1  ;;  %v269_v6 = vcombine.low %v13_v0, %v17_v1  ;;  %v272_v8 = vcombine.high %v14_v2, %v18_v5  ;;  %v271_v9 = vcombine.low %v14_v2, %v18_v5  ;;  %v16_v11 = vld [vmem:[%s345_s1 + $0x18] sm:$0xff]  ;;  %v12_v15 = vld [vmem:[%s346_s0] sm:$0xf] }
   0x4   :  { %v20_v12 = vld [vmem:[%s345_s1 + $0x38] sm:$0xff]  ;;  %v274_v13 = vcombine.high %v15_v7, %v19_v10  ;;  %v273_v16 = vcombine.low %v15_v7, %v19_v10 }
   0x5   :  { %65 = vmatprep.subr.bf16.mxu0 %v270_v4  ;;  %v276_v14 = vcombine.high %v16_v11, %v20_v12  ;;  %106 = vmatprep.subr.bf16.mxu1 %v272_v8  ;;  %v275_v17 = vcombine.low %v16_v11, %v20_v12 }
   0x6   :  { %66 = vmatpush1.bf16.msra.mxu0 %v269_v6  ;;  %107 = vmatpush1.bf16.msra.mxu1 %v271_v9 }
   0x7   :  { %147 = vmatprep.subr.bf16.mxu0 %v274_v13  ;;  %188 = vmatprep.subr.bf16.mxu1 %v276_v14 }
   0x9   :  { %277 = vmatmul.mubr.msk.bf16.vlgmr.msra.gmra.mrb[0].mxu0 %vm61_vm0, %v12_v15  ;;  %278 = vmatmul.mubr.msk.bf16.vlgmr.msra.gmra.mrb[0].mxu1 %vm61_vm0, %v12_v15 }
   0xa   :  { %148 = vmatpush1.bf16.msra.mxu0 %v273_v16  ;;  %189 = vmatpush1.bf16.msra.mxu1 %v275_v17 }
   0xb   :  { %179 = vmatprep.mubr.bf16.mxu0 %v290_v3  ;;  %220 = vmatprep.mubr.bf16.mxu1 %v290_v3 }
  0x11   :  { %279 = vmatmul.mubr.msk.bf16.vlgmr.msra.gmra.mrb[4].mxu0 %vm61_vm0, %v12_v15  ;;  %280 = vmatmul.mubr.msk.bf16.vlgmr.msra.gmra.mrb[4].mxu1 %vm61_vm0, %v12_v15 }
  0xdc   :  { %v99_v18 = vpop.f32.mrb[0].mxu0  ;;  %v140_v19 = vpop.f32.mrb[0].mxu1 }
  0xdd   :  { %v101_v20 = vpop.f32.mrb[1].mxu0  ;;  %v142_v22 = vpop.f32.mrb[1].mxu1 }
  0xde   :  { %v285_v21 = vpack.c.bf16 %v101_v20, %v99_v18  ;;  %v103_v23 = vpop.f32.mrb[2].mxu0  ;;  %v286_v24 = vpack.c.bf16 %v142_v22, %v140_v19  ;;  %v144_v25 = vpop.f32.mrb[2].mxu1 }
  0xdf   :  { %v104_v26 = vpop.f32.mrb[3].mxu0  ;;  %v145_v27 = vpop.f32.mrb[3].mxu1 }
  0xe0   :  { %261 = vst [vmem:[%s347_s2] sm:$0xff] %v285_v21  ;;  %262 = vst [vmem:[%s347_s2 + $0x8] sm:$0xff] %v286_v24 }
  0xe4   :  { %v181_v28 = vpop.f32.mrb[4].mxu0  ;;  %v222_v29 = vpop.f32.mrb[4].mxu1 }
  0xe5   :  { %v183_v30 = vpop.f32.mrb[5].mxu0  ;;  %v224_v32 = vpop.f32.mrb[5].mxu1 }
  0xe6   :  { %v287_v31 = vpack.c.bf16 %v183_v30, %v181_v28  ;;  %v185_v33 = vpop.f32.mrb[6].mxu0  ;;  %v288_v34 = vpack.c.bf16 %v224_v32, %v222_v29  ;;  %v226_v35 = vpop.f32.mrb[6].mxu1 }
  0xe7   :  { %v186_v36 = vpop.f32.mrb[7].mxu0  ;;  %v227_v37 = vpop.f32.mrb[7].mxu1 }
  0xe8   :  { %263 = vst [vmem:[%s347_s2 + $0x10] sm:$0xff] %v287_v31  ;;  %264 = vst [vmem:[%s347_s2 + $0x18] sm:$0xff] %v288_v34 }

// kernel: generator_forward.20
= control target key start
LH: loop header
LB: loop body
LE: loop exit
PB: predicated region body
PF: predicated region fallthrough
CT: control target
= control target key end

     0   :  { %v255_v0 = vmov 0   ;;  %s348_s1 = inlined_call_operand.vmem [shape: f32[64,1], index: 1, kind: input, shape index: {}]   ;;  %s349_s2 = inlined_call_operand.vmem [shape: f32[64,1], index: 2, kind: input, shape index: {}]   ;;  %s350_s0 = inlined_call_operand.vmem [shape: bf16[64,128], index: 0, kind: input, shape index: {}]   ;;  %s351_s3 = inlined_call_operand.vmem [shape: bf16[64,128], index: 3, kind: output, shape index: {}]  }
   0x1   :  { %254 = vset.pattern.permute.xlu1 %v255_v0  ;;  %253 = vset.pattern.permute.xlu0 %v255_v0  ;;  %v32_v1 = vld [vmem:[%s348_s1 + $0x10] sm:$0xff]  ;;  %v30_v2 = vld [vmem:[%s348_s1] sm:$0xff]  ;;  %v33_v3 = vld [vmem:[%s348_s1 + $0x18] sm:$0xff] }
   0x2   :  { %50 = vperm.xlu1 %254, %v32_v1   ;;  %40 = vperm.xlu0 %253, %v30_v2   ;;  %v31_v4 = vld [vmem:[%s348_s1 + $0x8] sm:$0xff]  ;;  %v34_v6 = vld [vmem:[%s348_s1 + $0x20] sm:$0xff]  ;;  %v37_v7 = vld [vmem:[%s348_s1 + $0x38] sm:$0xff] }
   0x3   :  { %v35_v5 = vld [vmem:[%s348_s1 + $0x28] sm:$0xff]  ;;  %v36_v8 = vld [vmem:[%s348_s1 + $0x30] sm:$0xff]  ;;  %v86_v10 = vld [vmem:[%s349_s2] sm:$0xff] }
   0x4   :  { %v87_v9 = vld [vmem:[%s349_s2 + $0x8] sm:$0xff]  ;;  %v89_v11 = vld [vmem:[%s349_s2 + $0x18] sm:$0xff]  ;;  %v88_v12 = vld [vmem:[%s349_s2 + $0x10] sm:$0xff] }
   0x5   :  { %v91_v13 = vld [vmem:[%s349_s2 + $0x28] sm:$0xff]  ;;  %v90_v14 = vld [vmem:[%s349_s2 + $0x20] sm:$0xff]  ;;  %v93_v15 = vld [vmem:[%s349_s2 + $0x38] sm:$0xff] }
   0x6   :  { %55 = vperm.xlu1 %254, %v33_v3   ;;  %45 = vperm.xlu0 %253, %v31_v4   ;;  %v92_v16 = vld [vmem:[%s349_s2 + $0x30] sm:$0xff]  ;;  %v211_v21 = vld [vmem:[%s350_s0] sm:$0xff]   ;;  %v246_v26 = vld [vmem:[%s350_s0 + $0x8] sm:$0xff]  }
   0x7   :  { %v212_v24 = vunpack.c.l.bf16 %v211_v21  ;;  %v213_v25 = vunpack.c.h.bf16 %v211_v21  ;;  %v216_v29 = vunpack.c.l.bf16 %v246_v26  ;;  %v217_v31 = vunpack.c.h.bf16 %v246_v26  ;;  %v247_v33 = vld [vmem:[%s350_s0 + $0x10] sm:$0xff]   ;;  %v248_v42 = vld [vmem:[%s350_s0 + $0x18] sm:$0xff]  }
   0x8   :  { %v221_v38 = vunpack.c.h.bf16 %v247_v33  ;;  %v220_v39 = vunpack.c.l.bf16 %v247_v33  ;;  %v225_v50 = vunpack.c.h.bf16 %v248_v42  ;;  %v224_v51 = vunpack.c.l.bf16 %v248_v42 }
   0xa   :  { %65 = vperm.xlu1 %254, %v35_v5   ;;  %60 = vperm.xlu0 %253, %v34_v6  }
   0xe   :  { %75 = vperm.xlu1 %254, %v37_v7   ;;  %70 = vperm.xlu0 %253, %v36_v8  }
  0x12   :  { %101 = vperm.xlu1 %254, %v87_v9   ;;  %96 = vperm.xlu0 %253, %v86_v10  }
  0x16   :  { %111 = vperm.xlu1 %254, %v89_v11   ;;  %106 = vperm.xlu0 %253, %v88_v12  }
  0x1a   :  { %121 = vperm.xlu1 %254, %v91_v13   ;;  %116 = vperm.xlu0 %253, %v90_v14  }
  0x1e   :  { %131 = vperm.xlu1 %254, %v93_v15   ;;  %126 = vperm.xlu0 %253, %v92_v16  }
  0x81   :  { %v51_v17 = vpop.permute.xlu1 %50  ;;  %v41_v18 = vpop.permute.xlu0 %40 }
  0x82   :  { %v78_v30 = vmul.f32 %v212_v24, %v41_v18  ;;  %v80_v40 = vmul.f32 %v216_v29, %v51_v17 }
  0x85   :  { %v56_v19 = vpop.permute.xlu1 %55  ;;  %v46_v20 = vpop.permute.xlu0 %45 }
  0x86   :  { %v79_v32 = vmul.f32 %v213_v25, %v46_v20  ;;  %v81_v41 = vmul.f32 %v217_v31, %v56_v19 }
  0x89   :  { %v66_v22 = vpop.permute.xlu1 %65  ;;  %v61_v23 = vpop.permute.xlu0 %60 }
  0x8a   :  { %v83_v52 = vmul.f32 %v221_v38, %v66_v22  ;;  %v82_v53 = vmul.f32 %v220_v39, %v61_v23 }
  0x8d   :  { %v76_v27 = vpop.permute.xlu1 %75  ;;  %v71_v28 = vpop.permute.xlu0 %70 }
  0x8e   :  { %v85_v61 = vmul.f32 %v225_v50, %v76_v27  ;;  %v84_v62 = vmul.f32 %v224_v51, %v71_v28 }
  0x91   :  { %v102_v34 = vpop.permute.xlu1 %101  ;;  %v97_v35 = vpop.permute.xlu0 %96 }
  0x92   :  { %v135_v36 = vadd.f32 %v102_v34, %v79_v32  ;;  %v134_v37 = vadd.f32 %v97_v35, %v78_v30 }
  0x94   :  { %v143_v43 = vmax.f32 %v135_v36, 0.0  ;;  %v142_v44 = vmax.f32 %v134_v37, 0.0 }
  0x95   :  { %v112_v45 = vpop.permute.xlu1 %111  ;;  %v107_v46 = vpop.permute.xlu0 %106 }
  0x96   :  { %v229_v47 = vpack.c.bf16 %v143_v43, %v142_v44  ;;  %v137_v48 = vadd.f32 %v112_v45, %v81_v41  ;;  %v136_v49 = vadd.f32 %v107_v46, %v80_v40 }
  0x98   :  { %230 = vst [vmem:[%s351_s3] sm:$0xff] %v229_v47   ;;  %v145_v54 = vmax.f32 %v137_v48, 0.0  ;;  %v144_v55 = vmax.f32 %v136_v49, 0.0 }
  0x99   :  { %v122_v56 = vpop.permute.xlu1 %121  ;;  %v117_v57 = vpop.permute.xlu0 %116 }
  0x9a   :  { %v234_v58 = vpack.c.bf16 %v145_v54, %v144_v55  ;;  %v139_v59 = vadd.f32 %v122_v56, %v83_v52  ;;  %v138_v60 = vadd.f32 %v117_v57, %v82_v53 }
  0x9c   :  { %249 = vst [vmem:[%s351_s3 + $0x8] sm:$0xff] %v234_v58   ;;  %v147_v63 = vmax.f32 %v139_v59, 0.0  ;;  %v146_v0 = vmax.f32 %v138_v60, 0.0 }
  0x9d   :  { %v132_v1 = vpop.permute.xlu1 %131  ;;  %v127_v2 = vpop.permute.xlu0 %126 }
  0x9e   :  { %v239_v3 = vpack.c.bf16 %v147_v63, %v146_v0  ;;  %v141_v4 = vadd.f32 %v132_v1, %v85_v61  ;;  %v140_v5 = vadd.f32 %v127_v2, %v84_v62 }
  0xa0   :  { %250 = vst [vmem:[%s351_s3 + $0x10] sm:$0xff] %v239_v3   ;;  %v149_v6 = vmax.f32 %v141_v4, 0.0  ;;  %v148_v7 = vmax.f32 %v140_v5, 0.0 }
  0xa2   :  { %v244_v8 = vpack.c.bf16 %v149_v6, %v148_v7 }
  0xa4   :  { %251 = vst [vmem:[%s351_s3 + $0x18] sm:$0xff] %v244_v8  }

// kernel: generator_forward.21
= control target key start
LH: loop header
LB: loop body
LE: loop exit
PB: predicated region body
PF: predicated region fallthrough
CT: control target
= control target key end

     0   :  { %s783_s1 = inlined_call_operand.vmem [shape: bf16[256,128], index: 1, kind: input, shape index: {}]   ;;  %s784_s0 = inlined_call_operand.vmem [shape: bf16[128,256], index: 0, kind: input, shape index: {}]   ;;  %s785_s2 = inlined_call_operand.vmem [shape: bf16[128,128], index: 2, kind: output, shape index: {}]  }
   0x1   :  { %v608_v0 = vld [vmem:[%s783_s1 + $0x40] sm:$0xff]   ;;  %v610_v2 = vld [vmem:[%s783_s1 + $0x48] sm:$0xff]   ;;  %v612_v4 = vld [vmem:[%s783_s1 + $0x50] sm:$0xff]  }
   0x2   :  { %v609_v1 = vld [vmem:[%s783_s1] sm:$0xff]   ;;  %528 = vmatprep.subr.bf16.mxu0 %v608_v0  ;;  %592 = vmatprep.subr.bf16.mxu1 %v608_v0  ;;  %v611_v3 = vld [vmem:[%s783_s1 + $0x8] sm:$0xff]   ;;  %v613_v5 = vld [vmem:[%s783_s1 + $0x10] sm:$0xff]  }
   0x3   :  { %529 = vmatpush3.bf16.msra.mxu0 %v609_v1  ;;  %600 = vmatpush3.bf16.msra.mxu1 %v609_v1  ;;  %v614_v6 = vld [vmem:[%s783_s1 + $0x58] sm:$0xff]   ;;  %v616_v8 = vld [vmem:[%s783_s1 + $0x60] sm:$0xff]   ;;  %v618_v10 = vld [vmem:[%s783_s1 + $0x68] sm:$0xff]  }
   0x4   :  { %530 = vmatprep.subr.bf16.mxu0 %v610_v2  ;;  %593 = vmatprep.subr.bf16.mxu1 %v610_v2  ;;  %v615_v7 = vld [vmem:[%s783_s1 + $0x18] sm:$0xff]   ;;  %v617_v9 = vld [vmem:[%s783_s1 + $0x20] sm:$0xff]   ;;  %v619_v13 = vld [vmem:[%s783_s1 + $0x28] sm:$0xff]  }
   0x5   :  { %v626_v11 = vld [vmem:[%s784_s0 + $0x4] ss:$8 sps:$4 sm:$0xff]   ;;  %v620_v14 = vld [vmem:[%s783_s1 + $0x70] sm:$0xff]   ;;  %v622_v16 = vld [vmem:[%s783_s1 + $0x78] sm:$0xff]  }
   0x6   :  { %v629_v12 = vld [vmem:[%s784_s0 + $0x44] ss:$8 sps:$4 sm:$0xff]   ;;  %268 = vmatprep.mubr.bf16.mxu0 %v626_v11  ;;  %v621_v15 = vld [vmem:[%s783_s1 + $0x30] sm:$0xff]   ;;  %v623_v17 = vld [vmem:[%s783_s1 + $0x38] sm:$0xff]  }
   0x7   :  { %531 = vmatpush3.bf16.msra.mxu0 %v611_v3  ;;  %601 = vmatpush3.bf16.msra.mxu1 %v611_v3  ;;  %v624_v18 = vld [vmem:[%s784_s0] ss:$8 sps:$4 sm:$0xff]   ;;  %v630_v20 = vld [vmem:[%s784_s0 + $0x14] ss:$8 sps:$4 sm:$0xff]   ;;  %v634_v22 = vld [vmem:[%s784_s0 + $0x10] ss:$8 sps:$4 sm:$0xff]  }
   0x8   :  { %532 = vmatprep.subr.bf16.mxu0 %v612_v4  ;;  %594 = vmatprep.subr.bf16.mxu1 %v612_v4  ;;  %v627_v19 = vld [vmem:[%s784_s0 + $0x40] ss:$8 sps:$4 sm:$0xff]   ;;  %v632_v21 = vld [vmem:[%s784_s0 + $0x54] ss:$8 sps:$4 sm:$0xff]   ;;  %v635_v23 = vld [vmem:[%s784_s0 + $0x50] ss:$8 sps:$4 sm:$0xff]  }
   0x9   :  { %300 = vmatprep.mubr.bf16.mxu1 %v629_v12  ;;  %v636_v24 = vld [vmem:[%s784_s0 + $0x24] ss:$8 sps:$4 sm:$0xff]   ;;  %v640_v26 = vld [vmem:[%s784_s0 + $0x20] ss:$8 sps:$4 sm:$0xff]   ;;  %v642_v28 = vld [vmem:[%s784_s0 + $0x34] ss:$8 sps:$4 sm:$0xff]  }
   0xa   :  { %v638_v25 = vld [vmem:[%s784_s0 + $0x64] ss:$8 sps:$4 sm:$0xff]   ;;  %v641_v27 = vld [vmem:[%s784_s0 + $0x60] ss:$8 sps:$4 sm:$0xff]   ;;  %v644_v29 = vld [vmem:[%s784_s0 + $0x74] ss:$8 sps:$4 sm:$0xff]  }
   0xb   :  { %533 = vmatpush3.bf16.msra.mxu0 %v613_v5  ;;  %602 = vmatpush3.bf16.msra.mxu1 %v613_v5  ;;  %v646_v30 = vld [vmem:[%s784_s0 + $0x30] ss:$8 sps:$4 sm:$0xff]  }
   0xc   :  { %534 = vmatprep.subr.bf16.mxu0 %v614_v6  ;;  %595 = vmatprep.subr.bf16.mxu1 %v614_v6  ;;  %v647_v31 = vld [vmem:[%s784_s0 + $0x70] ss:$8 sps:$4 sm:$0xff]  }
   0xf   :  { %535 = vmatpush3.bf16.msra.mxu0 %v615_v7  ;;  %603 = vmatpush3.bf16.msra.mxu1 %v615_v7 }
  0x10   :  { %536 = vmatprep.subr.bf16.mxu0 %v616_v8  ;;  %596 = vmatprep.subr.bf16.mxu1 %v616_v8 }
  0x13   :  { %537 = vmatpush3.bf16.msra.mxu0 %v617_v9  ;;  %604 = vmatpush3.bf16.msra.mxu1 %v617_v9 }
  0x14   :  { %538 = vmatprep.subr.bf16.mxu0 %v618_v10  ;;  %597 = vmatprep.subr.bf16.mxu1 %v618_v10 }
  0x17   :  { %539 = vmatpush3.bf16.msra.mxu0 %v619_v13  ;;  %605 = vmatpush3.bf16.msra.mxu1 %v619_v13 }
  0x18   :  { %540 = vmatprep.subr.bf16.mxu0 %v620_v14  ;;  %598 = vmatprep.subr.bf16.mxu1 %v620_v14 }
  0x1b   :  { %541 = vmatpush3.bf16.msra.mxu0 %v621_v15  ;;  %606 = vmatpush3.bf16.msra.mxu1 %v621_v15 }
  0x1c   :  { %542 = vmatprep.subr.bf16.mxu0 %v622_v16  ;;  %599 = vmatprep.subr.bf16.mxu1 %v622_v16 }
  0x1f   :  { %543 = vmatpush3.bf16.msra.mxu0 %v623_v17  ;;  %607 = vmatpush3.bf16.msra.mxu1 %v623_v17 }
  0x22   :  { %269 = vmatmul.mubr.bf16.vlgmr.msra.gmra.mrb[0].mxu0 %v624_v18  ;;  %301 = vmatmul.mubr.bf16.vlgmr.msra.gmra.mrb[0].mxu1 %v627_v19 }
  0x23   :  { %276 = vmatprep.mubr.bf16.mxu0 %v630_v20  ;;  %308 = vmatprep.mubr.bf16.mxu1 %v632_v21 }
  0x2a   :  { %277 = vmatmul.mubr.bf16.gmra.mrb[4].mxu0 %v634_v22  ;;  %309 = vmatmul.mubr.bf16.gmra.mrb[4].mxu1 %v635_v23 }
  0x2b   :  { %284 = vmatprep.mubr.bf16.mxu0 %v636_v24  ;;  %316 = vmatprep.mubr.bf16.mxu1 %v638_v25 }
  0x32   :  { %285 = vmatmul.mubr.bf16.gmra.mrb[8].mxu0 %v640_v26  ;;  %317 = vmatmul.mubr.bf16.gmra.mrb[8].mxu1 %v641_v27 }
  0x33   :  { %292 = vmatprep.mubr.bf16.mxu0 %v642_v28  ;;  %324 = vmatprep.mubr.bf16.mxu1 %v644_v29 }
  0x3a   :  { %293 = vmatmul.mubr.bf16.gmra.mrb[12].mxu0 %v646_v30  ;;  %325 = vmatmul.mubr.bf16.gmra.mrb[12].mxu1 %v647_v31 }
  0xf5   :  { %v544_v32 = vpop.f32.mrb[0].mxu0  ;;  %v568_v33 = vpop.f32.mrb[0].mxu1 }
  0xf6   :  { %v545_v34 = vpop.f32.mrb[1].mxu0  ;;  %v569_v35 = vpop.f32.mrb[1].mxu1 }
  0xf7   :  { %v546_v36 = vadd.f32 %v545_v34, %v544_v32  ;;  %v570_v37 = vadd.f32 %v569_v35, %v568_v33  ;;  %v547_v38 = vpop.f32.mrb[2].mxu0  ;;  %v571_v39 = vpop.f32.mrb[2].mxu1 }
  0xf8   :  { %v548_v40 = vpop.f32.mrb[3].mxu0  ;;  %v572_v41 = vpop.f32.mrb[3].mxu1 }
  0xf9   :  { %v549_v42 = vadd.f32 %v548_v40, %v547_v38  ;;  %v573_v43 = vadd.f32 %v572_v41, %v571_v39 }
  0xfb   :  { %v484_v44 = vpack.c.bf16 %v549_v42, %v546_v36  ;;  %v504_v45 = vpack.c.bf16 %v573_v43, %v570_v37 }
  0xfd   :  { %485 = vst [vmem:[%s785_s2] sm:$0xff] %v484_v44   ;;  %524 = vst [vmem:[%s785_s2 + $0x20] sm:$0xff] %v504_v45   ;;  %v550_v46 = vpop.f32.mrb[4].mxu0  ;;  %v574_v47 = vpop.f32.mrb[4].mxu1 }
  0xfe   :  { %v551_v48 = vpop.f32.mrb[5].mxu0  ;;  %v575_v49 = vpop.f32.mrb[5].mxu1 }
  0xff   :  { %v552_v50 = vadd.f32 %v551_v48, %v550_v46  ;;  %v576_v51 = vadd.f32 %v575_v49, %v574_v47  ;;  %v553_v52 = vpop.f32.mrb[6].mxu0  ;;  %v577_v53 = vpop.f32.mrb[6].mxu1 }
 0x100   :  { %v554_v54 = vpop.f32.mrb[7].mxu0  ;;  %v578_v55 = vpop.f32.mrb[7].mxu1 }
 0x101   :  { %v555_v56 = vadd.f32 %v554_v54, %v553_v52  ;;  %v579_v57 = vadd.f32 %v578_v55, %v577_v53 }
 0x103   :  { %v489_v58 = vpack.c.bf16 %v555_v56, %v552_v50  ;;  %v509_v59 = vpack.c.bf16 %v579_v57, %v576_v51 }
 0x105   :  { %521 = vst [vmem:[%s785_s2 + $0x8] sm:$0xff] %v489_v58   ;;  %525 = vst [vmem:[%s785_s2 + $0x28] sm:$0xff] %v509_v59   ;;  %v556_v60 = vpop.f32.mrb[8].mxu0  ;;  %v580_v61 = vpop.f32.mrb[8].mxu1 }
 0x106   :  { %v557_v62 = vpop.f32.mrb[9].mxu0  ;;  %v581_v63 = vpop.f32.mrb[9].mxu1 }
 0x107   :  { %v558_v0 = vadd.f32 %v557_v62, %v556_v60  ;;  %v582_v1 = vadd.f32 %v581_v63, %v580_v61  ;;  %v559_v2 = vpop.f32.mrb[10].mxu0  ;;  %v583_v3 = vpop.f32.mrb[10].mxu1 }
 0x108   :  { %v560_v4 = vpop.f32.mrb[11].mxu0  ;;  %v584_v5 = vpop.f32.mrb[11].mxu1 }
 0x109   :  { %v561_v6 = vadd.f32 %v560_v4, %v559_v2  ;;  %v585_v7 = vadd.f32 %v584_v5, %v583_v3 }
 0x10b   :  { %v494_v8 = vpack.c.bf16 %v561_v6, %v558_v0  ;;  %v514_v9 = vpack.c.bf16 %v585_v7, %v582_v1 }
 0x10d   :  { %522 = vst [vmem:[%s785_s2 + $0x10] sm:$0xff] %v494_v8   ;;  %526 = vst [vmem:[%s785_s2 + $0x30] sm:$0xff] %v514_v9   ;;  %v562_v10 = vpop.f32.mrb[12].mxu0  ;;  %v586_v11 = vpop.f32.mrb[12].mxu1 }
 0x10e   :  { %v563_v12 = vpop.f32.mrb[13].mxu0  ;;  %v587_v13 = vpop.f32.mrb[13].mxu1 }
 0x10f   :  { %v564_v14 = vadd.f32 %v563_v12, %v562_v10  ;;  %v588_v15 = vadd.f32 %v587_v13, %v586_v11  ;;  %v565_v16 = vpop.f32.mrb[14].mxu0  ;;  %v589_v17 = vpop.f32.mrb[14].mxu1 }
 0x110   :  { %v566_v18 = vpop.f32.mrb[15].mxu0  ;;  %v590_v19 = vpop.f32.mrb[15].mxu1 }
 0x111   :  { %v567_v20 = vadd.f32 %v566_v18, %v565_v16  ;;  %v591_v21 = vadd.f32 %v590_v19, %v589_v17 }
 0x113   :  { %v499_v22 = vpack.c.bf16 %v567_v20, %v564_v14  ;;  %v519_v23 = vpack.c.bf16 %v591_v21, %v588_v15 }
 0x115   :  { %523 = vst [vmem:[%s785_s2 + $0x18] sm:$0xff] %v499_v22   ;;  %527 = vst [vmem:[%s785_s2 + $0x38] sm:$0xff] %v519_v23  }

// kernel: generator_forward.22
= control target key start
LH: loop header
LB: loop body
LE: loop exit
PB: predicated region body
PF: predicated region fallthrough
CT: control target
= control target key end

     0   :  { %v137_v0 = vmov 0   ;;  %s194_s1 = inlined_call_operand.vmem [shape: f32[32,1], index: 1, kind: input, shape index: {}]   ;;  %s195_s2 = inlined_call_operand.vmem [shape: f32[32,1], index: 2, kind: input, shape index: {}]   ;;  %s196_s0 = inlined_call_operand.vmem [shape: bf16[32,128], index: 0, kind: input, shape index: {}]   ;;  %s197_s3 = inlined_call_operand.vmem [shape: bf16[32,128], index: 3, kind: output, shape index: {}]  }
   0x1   :  { %136 = vset.pattern.permute.xlu1 %v137_v0  ;;  %135 = vset.pattern.permute.xlu0 %v137_v0  ;;  %v24_v1 = vld [vmem:[%s194_s1 + $0x10] sm:$0xff]  ;;  %v22_v2 = vld [vmem:[%s194_s1] sm:$0xff]  ;;  %v25_v3 = vld [vmem:[%s194_s1 + $0x18] sm:$0xff] }
   0x2   :  { %38 = vperm.xlu1 %136, %v24_v1   ;;  %28 = vperm.xlu0 %135, %v22_v2   ;;  %v23_v4 = vld [vmem:[%s194_s1 + $0x8] sm:$0xff]  ;;  %v50_v6 = vld [vmem:[%s195_s2] sm:$0xff]  ;;  %v53_v7 = vld [vmem:[%s195_s2 + $0x18] sm:$0xff] }
   0x3   :  { %v51_v5 = vld [vmem:[%s195_s2 + $0x8] sm:$0xff]  ;;  %v52_v8 = vld [vmem:[%s195_s2 + $0x10] sm:$0xff]  ;;  %v115_v11 = vld [vmem:[%s196_s0] sm:$0xff]  }
   0x4   :  { %v116_v12 = vunpack.c.l.bf16 %v115_v11  ;;  %v117_v13 = vunpack.c.h.bf16 %v115_v11  ;;  %v132_v14 = vld [vmem:[%s196_s0 + $0x8] sm:$0xff]  }
   0x5   :  { %v120_v17 = vunpack.c.l.bf16 %v132_v14  ;;  %v121_v19 = vunpack.c.h.bf16 %v132_v14 }
   0x6   :  { %43 = vperm.xlu1 %136, %v25_v3   ;;  %33 = vperm.xlu0 %135, %v23_v4  }
   0xa   :  { %61 = vperm.xlu1 %136, %v51_v5   ;;  %56 = vperm.xlu0 %135, %v50_v6  }
   0xe   :  { %71 = vperm.xlu1 %136, %v53_v7   ;;  %66 = vperm.xlu0 %135, %v52_v8  }
  0x81   :  { %v39_v9 = vpop.permute.xlu1 %38  ;;  %v29_v10 = vpop.permute.xlu0 %28 }
  0x82   :  { %v46_v18 = vmul.f32 %v116_v12, %v29_v10  ;;  %v48_v25 = vmul.f32 %v120_v17, %v39_v9 }
  0x85   :  { %v44_v15 = vpop.permute.xlu1 %43  ;;  %v34_v16 = vpop.permute.xlu0 %33 }
  0x86   :  { %v47_v20 = vmul.f32 %v117_v13, %v34_v16  ;;  %v49_v26 = vmul.f32 %v121_v19, %v44_v15 }
  0x89   :  { %v62_v21 = vpop.permute.xlu1 %61  ;;  %v57_v22 = vpop.permute.xlu0 %56 }
  0x8a   :  { %v75_v23 = vadd.f32 %v62_v21, %v47_v20  ;;  %v74_v24 = vadd.f32 %v57_v22, %v46_v18 }
  0x8c   :  { %v79_v27 = vmax.f32 %v75_v23, 0.0  ;;  %v78_v28 = vmax.f32 %v74_v24, 0.0 }
  0x8d   :  { %v72_v29 = vpop.permute.xlu1 %71  ;;  %v67_v30 = vpop.permute.xlu0 %66 }
  0x8e   :  { %v125_v31 = vpack.c.bf16 %v79_v27, %v78_v28  ;;  %v77_v32 = vadd.f32 %v72_v29, %v49_v26  ;;  %v76_v33 = vadd.f32 %v67_v30, %v48_v25 }
  0x90   :  { %126 = vst [vmem:[%s197_s3] sm:$0xff] %v125_v31   ;;  %v81_v34 = vmax.f32 %v77_v32, 0.0  ;;  %v80_v35 = vmax.f32 %v76_v33, 0.0 }
  0x92   :  { %v130_v36 = vpack.c.bf16 %v81_v34, %v80_v35 }
  0x94   :  { %133 = vst [vmem:[%s197_s3 + $0x8] sm:$0xff] %v130_v36  }

// kernel: generator_forward.23
= control target key start
LH: loop header
LB: loop body
LE: loop exit
PB: predicated region body
PF: predicated region fallthrough
CT: control target
= control target key end

     0   :  { %v354_v1 = vmov 0   ;;  %s454_s1 = inlined_call_operand.vmem [shape: bf16[128,256], index: 1, kind: input, shape index: {}]   ;;  %s455_s0 = inlined_call_operand.vmem [shape: bf16[64,128], index: 0, kind: input, shape index: {}]   ;;  %s456_s2 = inlined_call_operand.vmem [shape: bf16[64,256], index: 2, kind: output, shape index: {}]  }
   0x1   :  { %v326_v0 = vld [vmem:[%s454_s1 + $0x4] ss:$8 sps:$4 sm:$0xff]   ;;  %172 = vmatprep.mubr.bf16.mxu0 %v354_v1  ;;  %192 = vmatprep.mubr.bf16.mxu1 %v354_v1  ;;  %v328_v2 = vld [vmem:[%s454_s1] ss:$8 sps:$4 sm:$0xff]   ;;  %v329_v3 = vld [vmem:[%s454_s1 + $0x14] ss:$8 sps:$4 sm:$0xff]  }
   0x2   :  { %140 = vmatprep.subr.bf16.mxu0 %v326_v0  ;;  %309 = vmatprep.subr.bf16.mxu1 %v326_v0  ;;  %v331_v4 = vld [vmem:[%s454_s1 + $0x10] ss:$8 sps:$4 sm:$0xff]   ;;  %v332_v5 = vld [vmem:[%s454_s1 + $0x24] ss:$8 sps:$4 sm:$0xff]   ;;  %v334_v6 = vld [vmem:[%s454_s1 + $0x20] ss:$8 sps:$4 sm:$0xff]  }
   0x3   :  { %141 = vmatpush1.bf16.msra.mxu0 %v328_v2  ;;  %317 = vmatpush1.bf16.msra.mxu1 %v328_v2  ;;  %v335_v7 = vld [vmem:[%s454_s1 + $0x34] ss:$8 sps:$4 sm:$0xff]   ;;  %v337_v8 = vld [vmem:[%s454_s1 + $0x30] ss:$8 sps:$4 sm:$0xff]   ;;  %v338_v9 = vld [vmem:[%s454_s1 + $0x44] ss:$8 sps:$4 sm:$0xff]  }
   0x4   :  { %142 = vmatprep.subr.bf16.mxu0 %v329_v3  ;;  %310 = vmatprep.subr.bf16.mxu1 %v329_v3  ;;  %v340_v10 = vld [vmem:[%s454_s1 + $0x40] ss:$8 sps:$4 sm:$0xff]   ;;  %v341_v11 = vld [vmem:[%s454_s1 + $0x54] ss:$8 sps:$4 sm:$0xff]   ;;  %v343_v12 = vld [vmem:[%s454_s1 + $0x50] ss:$8 sps:$4 sm:$0xff]  }
   0x5   :  { %v344_v13 = vld [vmem:[%s454_s1 + $0x64] ss:$8 sps:$4 sm:$0xff]   ;;  %v346_v14 = vld [vmem:[%s454_s1 + $0x60] ss:$8 sps:$4 sm:$0xff]   ;;  %v347_v15 = vld [vmem:[%s454_s1 + $0x74] ss:$8 sps:$4 sm:$0xff]  }
   0x6   :  { %v349_v16 = vld [vmem:[%s454_s1 + $0x70] ss:$8 sps:$4 sm:$0xff]   ;;  %v350_v17 = vld [vmem:[%s455_s0] sm:$0xff]   ;;  %v352_v19 = vld [vmem:[%s455_s0 + $0x8] sm:$0xff]  }
   0x7   :  { %143 = vmatpush1.bf16.msra.mxu0 %v331_v4  ;;  %318 = vmatpush1.bf16.msra.mxu1 %v331_v4  ;;  %v351_v18 = vld [vmem:[%s455_s0 + $0x10] sm:$0xff]   ;;  %v353_v20 = vld [vmem:[%s455_s0 + $0x18] sm:$0xff]  }
   0x8   :  { %144 = vmatprep.subr.bf16.mxu0 %v332_v5  ;;  %311 = vmatprep.subr.bf16.mxu1 %v332_v5 }
   0xb   :  { %145 = vmatpush1.bf16.msra.mxu0 %v334_v6  ;;  %319 = vmatpush1.bf16.msra.mxu1 %v334_v6 }
   0xc   :  { %146 = vmatprep.subr.bf16.mxu0 %v335_v7  ;;  %312 = vmatprep.subr.bf16.mxu1 %v335_v7 }
   0xf   :  { %147 = vmatpush1.bf16.msra.mxu0 %v337_v8  ;;  %320 = vmatpush1.bf16.msra.mxu1 %v337_v8 }
  0x10   :  { %148 = vmatprep.subr.bf16.mxu0 %v338_v9  ;;  %313 = vmatprep.subr.bf16.mxu1 %v338_v9 }
  0x13   :  { %149 = vmatpush1.bf16.msra.mxu0 %v340_v10  ;;  %321 = vmatpush1.bf16.msra.mxu1 %v340_v10 }
  0x14   :  { %150 = vmatprep.subr.bf16.mxu0 %v341_v11  ;;  %314 = vmatprep.subr.bf16.mxu1 %v341_v11 }
  0x17   :  { %151 = vmatpush1.bf16.msra.mxu0 %v343_v12  ;;  %322 = vmatpush1.bf16.msra.mxu1 %v343_v12 }
  0x18   :  { %152 = vmatprep.subr.bf16.mxu0 %v344_v13  ;;  %315 = vmatprep.subr.bf16.mxu1 %v344_v13 }
  0x1b   :  { %153 = vmatpush1.bf16.msra.mxu0 %v346_v14  ;;  %323 = vmatpush1.bf16.msra.mxu1 %v346_v14 }
  0x1c   :  { %154 = vmatprep.subr.bf16.mxu0 %v347_v15  ;;  %316 = vmatprep.subr.bf16.mxu1 %v347_v15 }
  0x1f   :  { %155 = vmatpush1.bf16.msra.mxu0 %v349_v16  ;;  %324 = vmatpush1.bf16.msra.mxu1 %v349_v16 }
  0x22   :  { %173 = vmatmul.mubr.bf16.vlgmr.msra.gmra.mrb[0].mxu0 %v350_v17  ;;  %193 = vmatmul.mubr.bf16.vlgmr.msra.gmra.mrb[0].mxu1 %v351_v18 }
  0x23   :  { %182 = vmatprep.mubr.bf16.mxu0 %v354_v1  ;;  %202 = vmatprep.mubr.bf16.mxu1 %v354_v1 }
  0x2a   :  { %183 = vmatmul.mubr.bf16.gmra.mrb[4].mxu0 %v352_v19  ;;  %203 = vmatmul.mubr.bf16.gmra.mrb[4].mxu1 %v353_v20 }
  0xf5   :  { %v174_v21 = vpop.f32.mrb[0].mxu0  ;;  %v194_v22 = vpop.f32.mrb[0].mxu1 }
  0xf6   :  { %v176_v23 = vpop.f32.mrb[1].mxu0  ;;  %v196_v24 = vpop.f32.mrb[1].mxu1 }
  0xf7   :  { %v301_v25 = vpack.c.bf16 %v176_v23, %v174_v21  ;;  %v305_v26 = vpack.c.bf16 %v196_v24, %v194_v22  ;;  %v178_v27 = vpop.f32.mrb[2].mxu0  ;;  %v198_v28 = vpop.f32.mrb[2].mxu1 }
  0xf8   :  { %v180_v29 = vpop.f32.mrb[3].mxu0  ;;  %v200_v30 = vpop.f32.mrb[3].mxu1 }
  0xf9   :  { %261 = vst [vmem:[%s456_s2] sm:$0xff] %v301_v25  ;;  %265 = vst [vmem:[%s456_s2 + $0x20] sm:$0xff] %v305_v26  ;;  %v302_v31 = vpack.c.bf16 %v180_v29, %v178_v27  ;;  %v306_v32 = vpack.c.bf16 %v200_v30, %v198_v28 }
  0xfb   :  { %262 = vst [vmem:[%s456_s2 + $0x8] sm:$0xff] %v302_v31  ;;  %266 = vst [vmem:[%s456_s2 + $0x28] sm:$0xff] %v306_v32 }
  0xfd   :  { %v184_v33 = vpop.f32.mrb[4].mxu0  ;;  %v204_v34 = vpop.f32.mrb[4].mxu1 }
  0xfe   :  { %v186_v35 = vpop.f32.mrb[5].mxu0  ;;  %v206_v36 = vpop.f32.mrb[5].mxu1 }
  0xff   :  { %v303_v37 = vpack.c.bf16 %v186_v35, %v184_v33  ;;  %v307_v38 = vpack.c.bf16 %v206_v36, %v204_v34  ;;  %v188_v39 = vpop.f32.mrb[6].mxu0  ;;  %v208_v40 = vpop.f32.mrb[6].mxu1 }
 0x100   :  { %v190_v41 = vpop.f32.mrb[7].mxu0  ;;  %v210_v42 = vpop.f32.mrb[7].mxu1 }
 0x101   :  { %263 = vst [vmem:[%s456_s2 + $0x10] sm:$0xff] %v303_v37  ;;  %267 = vst [vmem:[%s456_s2 + $0x30] sm:$0xff] %v307_v38  ;;  %v304_v43 = vpack.c.bf16 %v190_v41, %v188_v39  ;;  %v308_v44 = vpack.c.bf16 %v210_v42, %v208_v40 }
 0x103   :  { %264 = vst [vmem:[%s456_s2 + $0x18] sm:$0xff] %v304_v43  ;;  %268 = vst [vmem:[%s456_s2 + $0x38] sm:$0xff] %v308_v44 }

// kernel: generator_forward.24
= control target key start
LH: loop header
LB: loop body
LE: loop exit
PB: predicated region body
PF: predicated region fallthrough
CT: control target
= control target key end

     0   :  { %v117_v0 = vmov 0   ;;  %s174_s2 = inlined_call_operand.vmem [shape: f32[16,1], index: 2, kind: input, shape index: {}]   ;;  %s175_s1 = inlined_call_operand.vmem [shape: f32[16,1], index: 1, kind: input, shape index: {}]   ;;  %s176_s0 = inlined_call_operand.vmem [shape: bf16[16,512], index: 0, kind: input, shape index: {}]   ;;  %s177_s3 = inlined_call_operand.vmem [shape: bf16[16,512], index: 3, kind: output, shape index: {}]  }
   0x1   :  { %116 = vset.pattern.permute.xlu1 %v117_v0  ;;  %115 = vset.pattern.permute.xlu0 %v117_v0  ;;  %v46_v1 = vld [vmem:[%s174_s2] sm:$0xff]  ;;  %v47_v3 = vld [vmem:[%s174_s2 + $0x8] sm:$0xff]  ;;  %v16_v11 = vld [vmem:[%s176_s0 + $0x10] sm:$0xff] }
   0x2   :  { %v26_v2 = vld [vmem:[%s175_s1] sm:$0xff]  ;;  %50 = vperm.xlu1 %116, %v46_v1   ;;  %v27_v4 = vld [vmem:[%s175_s1 + $0x8] sm:$0xff]  ;;  %v17_v12 = vld [vmem:[%s176_s0 + $0x18] sm:$0xff]  ;;  %v22_v19 = vunpack.c.l.bf16 %v16_v11  ;;  %v23_v20 = vunpack.c.h.bf16 %v16_v11 }
   0x3   :  { %30 = vperm.xlu0 %115, %v26_v2   ;;  %v14_v5 = vld [vmem:[%s176_s0] sm:$0xff]  ;;  %v15_v6 = vld [vmem:[%s176_s0 + $0x8] sm:$0xff]  ;;  %v24_v21 = vunpack.c.l.bf16 %v17_v12  ;;  %v25_v22 = vunpack.c.h.bf16 %v17_v12 }
   0x4   :  { %v18_v7 = vunpack.c.l.bf16 %v14_v5  ;;  %v19_v8 = vunpack.c.h.bf16 %v14_v5  ;;  %v20_v9 = vunpack.c.l.bf16 %v15_v6  ;;  %v21_v10 = vunpack.c.h.bf16 %v15_v6 }
   0x6   :  { %55 = vperm.xlu1 %116, %v47_v3  }
   0x7   :  { %35 = vperm.xlu0 %115, %v27_v4  }
  0x81   :  { %v51_v14 = vpop.permute.xlu1 %50 }
  0x82   :  { %v31_v13 = vpop.permute.xlu0 %30 }
  0x83   :  { %v38_v15 = vmul.f32 %v31_v13, %v18_v7  ;;  %v39_v16 = vmul.f32 %v31_v13, %v19_v8  ;;  %v40_v17 = vmul.f32 %v31_v13, %v20_v9  ;;  %v41_v18 = vmul.f32 %v31_v13, %v21_v10 }
  0x85   :  { %v58_v23 = vadd.f32 %v51_v14, %v38_v15  ;;  %v59_v24 = vadd.f32 %v51_v14, %v39_v16  ;;  %v60_v25 = vadd.f32 %v51_v14, %v40_v17  ;;  %v61_v26 = vadd.f32 %v51_v14, %v41_v18  ;;  %v56_v38 = vpop.permute.xlu1 %55 }
  0x86   :  { %v36_v27 = vpop.permute.xlu0 %35 }
  0x87   :  { %v66_v28 = vmax.f32 %v58_v23, 0.0  ;;  %v67_v29 = vmax.f32 %v59_v24, 0.0  ;;  %v68_v30 = vmax.f32 %v60_v25, 0.0  ;;  %v69_v31 = vmax.f32 %v61_v26, 0.0 }
  0x88   :  { %v42_v32 = vmul.f32 %v36_v27, %v22_v19  ;;  %v43_v33 = vmul.f32 %v36_v27, %v23_v20  ;;  %v44_v34 = vmul.f32 %v36_v27, %v24_v21  ;;  %v45_v35 = vmul.f32 %v36_v27, %v25_v22 }
  0x89   :  { %v110_v36 = vpack.c.bf16 %v67_v29, %v66_v28  ;;  %v111_v37 = vpack.c.bf16 %v69_v31, %v68_v30 }
  0x8a   :  { %v62_v39 = vadd.f32 %v56_v38, %v42_v32  ;;  %v63_v40 = vadd.f32 %v56_v38, %v43_v33  ;;  %v64_v41 = vadd.f32 %v56_v38, %v44_v34  ;;  %v65_v42 = vadd.f32 %v56_v38, %v45_v35 }
  0x8b   :  { %98 = vst [vmem:[%s177_s3] sm:$0xff] %v110_v36  ;;  %99 = vst [vmem:[%s177_s3 + $0x8] sm:$0xff] %v111_v37 }
  0x8c   :  { %v70_v43 = vmax.f32 %v62_v39, 0.0  ;;  %v71_v44 = vmax.f32 %v63_v40, 0.0  ;;  %v72_v45 = vmax.f32 %v64_v41, 0.0  ;;  %v73_v46 = vmax.f32 %v65_v42, 0.0 }
  0x8e   :  { %v112_v47 = vpack.c.bf16 %v71_v44, %v70_v43  ;;  %v113_v48 = vpack.c.bf16 %v73_v46, %v72_v45 }
  0x90   :  { %100 = vst [vmem:[%s177_s3 + $0x10] sm:$0xff] %v112_v47  ;;  %101 = vst [vmem:[%s177_s3 + $0x18] sm:$0xff] %v113_v48 }

// kernel: generator_forward.25
= control target key start
LH: loop header
LB: loop body
LE: loop exit
PB: predicated region body
PF: predicated region fallthrough
CT: control target
= control target key end

     0   :  { %v497_v1 = vmov 0   ;;  %vm154_vm0 = vcmask 523264   ;;  %s621_s1 = inlined_call_operand.vmem [shape: bf16[64,640], index: 1, kind: input, shape index: {}]   ;;  %s622_s0 = inlined_call_operand.vmem [shape: bf16[32,64], index: 0, kind: input, shape index: {}]   ;;  %s623_s2 = inlined_call_operand.vmem [shape: bf16[32,640], index: 2, kind: output, shape index: {}]  }
   0x1   :  { %v467_v0 = vld [vmem:[%s621_s1 + $0x4] ss:$20 sps:$4 sm:$0xff]   ;;  %193 = vmatprep.mubr.bf16.mxu0 %v497_v1  ;;  %246 = vmatprep.mubr.bf16.mxu1 %v497_v1  ;;  %v469_v2 = vld [vmem:[%s621_s1] ss:$20 sps:$4 sm:$0xff]   ;;  %v472_v4 = vld [vmem:[%s621_s1 + $0x28] ss:$20 sps:$4 sm:$0xff]  }
   0x2   :  { %161 = vmatprep.subr.bf16.mxu0 %v467_v0  ;;  %v470_v3 = vld [vmem:[%s621_s1 + $0x2c] ss:$20 sps:$4 sm:$0xff]   ;;  %v475_v6 = vld [vmem:[%s621_s1 + $0x8] ss:$20 sps:$4 sm:$0xff]   ;;  %v481_v9 = vld [vmem:[%s621_s1 + $0x30] ss:$20 sps:$4 sm:$0xff]  }
   0x3   :  { %162 = vmatpush1.bf16.msra.mxu0 %v469_v2  ;;  %v473_v5 = vld [vmem:[%s621_s1 + $0xc] ss:$20 sps:$4 sm:$0xff]   ;;  %v476_v7 = vld [vmem:[%s621_s1 + $0x54] ss:$20 sps:$4 sm:$0xff]   ;;  %v478_v10 = vld [vmem:[%s621_s1 + $0x50] ss:$20 sps:$4 sm:$0xff]  }
   0x4   :  { %163 = vmatprep.subr.bf16.mxu0 %v470_v3  ;;  %214 = vmatprep.subr.bf16.mxu1 %v473_v5  ;;  %v479_v8 = vld [vmem:[%s621_s1 + $0x34] ss:$20 sps:$4 sm:$0xff]   ;;  %v482_v11 = vld [vmem:[%s621_s1 + $0x7c] ss:$20 sps:$4 sm:$0xff]   ;;  %v487_v13 = vld [vmem:[%s621_s1 + $0x58] ss:$20 sps:$4 sm:$0xff]  }
   0x5   :  { %215 = vmatpush1.bf16.msra.mxu1 %v475_v6  ;;  %v485_v12 = vld [vmem:[%s621_s1 + $0x5c] ss:$20 sps:$4 sm:$0xff]   ;;  %v484_v14 = vld [vmem:[%s621_s1 + $0x78] ss:$20 sps:$4 sm:$0xff]   ;;  %v488_v17 = vld [vmem:[%s622_s0] sm:$0xff]  }
   0x6   :  { %216 = vmatprep.subr.bf16.mxu1 %v479_v8  ;;  %v489_v15 = vld [vmem:[%s621_s1 + $0x10] ss:$20 sps:$4 sm:$0xff]   ;;  %v492_v18 = vld [vmem:[%s621_s1 + $0x80] ss:$20 sps:$4 sm:$0xff]   ;;  %v493_v19 = vld [vmem:[%s621_s1 + $0x38] ss:$20 sps:$4 sm:$0xff]  }
   0x7   :  { %164 = vmatpush1.bf16.msra.mxu0 %v472_v4  ;;  %v490_v16 = vld [vmem:[%s621_s1 + $0x84] ss:$20 sps:$4 sm:$0xff]   ;;  %v495_v20 = vld [vmem:[%s621_s1 + $0x60] ss:$20 sps:$4 sm:$0xff]   ;;  %v494_v21 = vld [vmem:[%s622_s0 + $0x8] sm:$0xff]  }
   0x8   :  { %165 = vmatprep.subr.bf16.mxu0 %v476_v7  ;;  %v496_v22 = vld [vmem:[%s621_s1 + $0x88] ss:$20 sps:$4 sm:$0xff]  }
   0x9   :  { %217 = vmatpush1.bf16.msra.mxu1 %v481_v9 }
   0xa   :  { %218 = vmatprep.subr.bf16.mxu1 %v485_v12 }
   0xb   :  { %166 = vmatpush1.bf16.msra.mxu0 %v478_v10 }
   0xc   :  { %167 = vmatprep.subr.bf16.mxu0 %v482_v11 }
   0xd   :  { %219 = vmatpush1.bf16.msra.mxu1 %v487_v13 }
   0xe   :  { %220 = vmatprep.subr.bf16.mxu1 %v490_v16 }
   0xf   :  { %168 = vmatpush1.bf16.msra.mxu0 %v484_v14 }
  0x10   :  { %454 = vmatprep.subr.bf16.mxu0 %v489_v15 }
  0x11   :  { %221 = vmatpush1.bf16.msra.mxu1 %v492_v18 }
  0x12   :  { %418 = vmatmul.mubr.msk.bf16.vlgmr.msra.gmra.mrb[0].mxu0 %vm154_vm0, %v488_v17 }
  0x13   :  { %455 = vmatpush3.bf16.msra.mxu0 %v489_v15  ;;  %203 = vmatprep.mubr.bf16.mxu0 %v497_v1 }
  0x14   :  { %456 = vmatprep.subr.bf16.mxu0 %v493_v19  ;;  %420 = vmatmul.mubr.msk.bf16.vlgmr.msra.gmra.mrb[0].mxu1 %vm154_vm0, %v488_v17 }
  0x15   :  { %256 = vmatprep.mubr.bf16.mxu1 %v497_v1 }
  0x17   :  { %457 = vmatpush3.bf16.msra.mxu0 %v493_v19 }
  0x18   :  { %458 = vmatprep.subr.bf16.mxu0 %v495_v20 }
  0x1a   :  { %419 = vmatmul.mubr.msk.bf16.gmra.mrb[4].mxu0 %vm154_vm0, %v494_v21 }
  0x1b   :  { %459 = vmatpush3.bf16.msra.mxu0 %v495_v20  ;;  %462 = vmatprep.mubr.msk.bf16.mxu0 %vm154_vm0, %v488_v17 }
  0x1c   :  { %460 = vmatprep.subr.bf16.mxu0 %v496_v22  ;;  %421 = vmatmul.mubr.msk.bf16.gmra.mrb[4].mxu1 %vm154_vm0, %v494_v21 }
  0x1f   :  { %461 = vmatpush3.bf16.msra.mxu0 %v496_v22 }
  0x22   :  { %463 = vmatmul.mubr.msk.bf16.vlgmr.msra.gmra.mrb[8].mxu0 %vm154_vm0, %v494_v21 }
  0xe5   :  { %v195_v23 = vpop.f32.mrb[0].mxu0 }
  0xe6   :  { %v197_v24 = vpop.f32.mrb[1].mxu0 }
  0xe7   :  { %v436_v25 = vpack.c.bf16 %v197_v24, %v195_v23  ;;  %v199_v26 = vpop.f32.mrb[2].mxu0  ;;  %v248_v28 = vpop.f32.mrb[0].mxu1 }
  0xe8   :  { %v201_v27 = vpop.f32.mrb[3].mxu0  ;;  %v250_v30 = vpop.f32.mrb[1].mxu1 }
  0xe9   :  { %380 = vst [vmem:[%s623_s2] sm:$0xff] %v436_v25  ;;  %v439_v29 = vpack.c.bf16 %v201_v27, %v199_v26  ;;  %v437_v31 = vpack.c.bf16 %v250_v30, %v248_v28  ;;  %v252_v32 = vpop.f32.mrb[2].mxu1 }
  0xea   :  { %v254_v33 = vpop.f32.mrb[3].mxu1 }
  0xeb   :  { %383 = vst [vmem:[%s623_s2 + $0x14] sm:$0xff] %v439_v29  ;;  %381 = vst [vmem:[%s623_s2 + $0x8] sm:$0xff] %v437_v31  ;;  %v440_v34 = vpack.c.bf16 %v254_v33, %v252_v32 }
  0xed   :  { %v205_v35 = vpop.f32.mrb[4].mxu0  ;;  %384 = vst [vmem:[%s623_s2 + $0x1c] sm:$0xff] %v440_v34 }
  0xee   :  { %v207_v36 = vpop.f32.mrb[5].mxu0 }
  0xef   :  { %v442_v37 = vpack.c.bf16 %v207_v36, %v205_v35  ;;  %v209_v38 = vpop.f32.mrb[6].mxu0  ;;  %v258_v40 = vpop.f32.mrb[4].mxu1 }
  0xf0   :  { %v211_v39 = vpop.f32.mrb[7].mxu0  ;;  %v260_v42 = vpop.f32.mrb[5].mxu1 }
  0xf1   :  { %386 = vst [vmem:[%s623_s2 + $0x28] sm:$0xff] %v442_v37  ;;  %v445_v41 = vpack.c.bf16 %v211_v39, %v209_v38  ;;  %v443_v43 = vpack.c.bf16 %v260_v42, %v258_v40  ;;  %v262_v44 = vpop.f32.mrb[6].mxu1 }
  0xf2   :  { %v264_v45 = vpop.f32.mrb[7].mxu1 }
  0xf3   :  { %389 = vst [vmem:[%s623_s2 + $0x3c] sm:$0xff] %v445_v41  ;;  %387 = vst [vmem:[%s623_s2 + $0x30] sm:$0xff] %v443_v43  ;;  %v446_v46 = vpack.c.bf16 %v264_v45, %v262_v44 }
  0xf5   :  { %v464_v47 = vpop.f32.mrb[8].mxu0  ;;  %390 = vst [vmem:[%s623_s2 + $0x44] sm:$0xff] %v446_v46 }
  0xf6   :  { %v444_v48 = vpack.c.bf16 %v464_v47, %v464_v47  ;;  %v301_v49 = vpop.f32.mrb[9].mxu0 }
  0xf7   :  { %v438_v50 = vpack.c.bf16 %v301_v49, %v301_v49  ;;  %v465_v51 = vpop.f32.mrb[10].mxu0 }
  0xf8   :  { %388 = vst [vmem:[%s623_s2 + $0x38] sm:$0xf] %v444_v48  ;;  %v447_v52 = vpack.c.bf16 %v465_v51, %v465_v51  ;;  %v304_v53 = vpop.f32.mrb[11].mxu0 }
  0xf9   :  { %382 = vst [vmem:[%s623_s2 + $0x10] sm:$0xf] %v438_v50  ;;  %v441_v54 = vpack.c.bf16 %v304_v53, %v304_v53 }
  0xfa   :  { %391 = vst [vmem:[%s623_s2 + $0x4c] sm:$0xf] %v447_v52 }
  0xfb   :  { %385 = vst [vmem:[%s623_s2 + $0x24] sm:$0xf] %v441_v54 }

// kernel: mul.87
= control target key start
LH: loop header
LB: loop body
LE: loop exit
PB: predicated region body
PF: predicated region fallthrough
CT: control target
= control target key end

     0   :  { %s34_s0 = inlined_call_operand.vmem [shape: f32[8,1], index: 0, kind: input, shape index: {}]   ;;  %s35_s1 = inlined_call_operand.vmem [shape: f32[8,1], index: 1, kind: input, shape index: {}]   ;;  %s36_s2 = inlined_call_operand.vmem [shape: f32[8,1], index: 2, kind: output, shape index: {}]  }
   0x1   :  { %v3_v0 = vld [vmem:[%s34_s0] sm:$0xff] }
   0x2   :  { %v4_v1 = vld [vmem:[%s35_s1] sm:$0xff] }
   0x3   :  { %v7_v2 = vmul.f32 %v4_v1, %v3_v0 }
   0x5   :  { %9 = vst [vmem:[%s36_s2] sm:$0xff] %v7_v2 }

// kernel: generator_forward.26
= control target key start
LH: loop header
LB: loop body
LE: loop exit
PB: predicated region body
PF: predicated region fallthrough
CT: control target
= control target key end

     0   :  { %s372_s12 = smov 0   ;;  %s402_s0 = inlined_call_operand.vmem [shape: bf16[8,2048], index: 0, kind: input, shape index: {}]   ;;  %s403_s1 = inlined_call_operand.vmem [shape: f32[8,1], index: 1, kind: input, shape index: {}]   ;;  %s404_s2 = inlined_call_operand.vmem [shape: f32[8,1], index: 2, kind: input, shape index: {}]   ;;  %s405_s3 = inlined_call_operand.vmem [shape: bf16[8,2048], index: 3, kind: output, shape index: {}]  }
   0x1 LB: > { %s314_s13 = sadd.s32 4294967295, %s349_s12   ;;  %p318_p0 = scmp.ge.s32.totalorder %s349_s12, 1  ;;  %s349_s12 = sphi %s372_s12, %s13_s12  }
   0x2   : > { %p138_p1 = scmp.lt.s32.totalorder %s349_s12, 3 }
   0x4   : > { %p139_p2 = pnand %p318_p0, %p138_p1 }
   0x5   : > { %v186_v0 = vld [vmem:[%s403_s1] sm:$0xff] (!%p139_p2)  ;;  %v351_v1 = vmov (!%p139_p2), 0   ;;  %s319_s18 = sshll.u32 (!%p139_p2), %s314_s13, 3 }
   0x6   : > { %142 = sbr.rel (%p139_p2) target bundleno = 147 (0x93), region = 32  ;;  %342 = vset.pattern.permute.xlu0 (!%p139_p2), %v351_v1  ;;  %v200_v2 = vld [vmem:[%s404_s2] sm:$0xff] (!%p139_p2)  ;;  %p163_p3 = scmp.lt.s32.totalorder (!%p139_p2), %s319_s18, 15 }
   0x7   : > { %189 = vperm.xlu0 (!%p139_p2), %342, %v186_v0  }
   0xb   : > { %203 = vperm.xlu0 (!%p139_p2), %342, %v200_v2  }
   0xd   : > { %s407_s18 = smov (!%p163_p3, %s319_s18), 15 }
   0xe   : > { %s320_s19 = sshll.u32 %s407_s18, 2 }
   0xf   : > { %s166_s22 = scalar_lea.vmem %s402_s0, %s320_s19  ;;  %s172_s25 = scalar_lea.vmem %s405_s3, %s320_s19 }
  0x10   : > { %v174_v3 = vld [vmem:[%s166_s22] sm:$0xff]  ;;  %v175_v4 = vld [vmem:[%s166_s22 + $0x8] sm:$0xff]  ;;  %v176_v5 = vld [vmem:[%s166_s22 + $0x10] sm:$0xff] }
  0x11   : > { %v177_v6 = vld [vmem:[%s166_s22 + $0x18] sm:$0xff]  ;;  %v178_v7 = vunpack.c.l.bf16 %v174_v3  ;;  %v179_v8 = vunpack.c.h.bf16 %v174_v3  ;;  %v180_v9 = vunpack.c.l.bf16 %v175_v4  ;;  %v181_v10 = vunpack.c.h.bf16 %v175_v4 }
  0x12   : > { %v182_v12 = vunpack.c.l.bf16 %v176_v5  ;;  %v183_v13 = vunpack.c.h.bf16 %v176_v5  ;;  %v184_v14 = vunpack.c.l.bf16 %v177_v6  ;;  %v185_v15 = vunpack.c.h.bf16 %v177_v6 }
  0x86   : > { %v190_v11 = vpop.permute.xlu0 %189 }
  0x87   : > { %v192_v16 = vmul.f32 %v190_v11, %v178_v7  ;;  %v193_v17 = vmul.f32 %v190_v11, %v179_v8  ;;  %v194_v18 = vmul.f32 %v190_v11, %v180_v9  ;;  %v195_v19 = vmul.f32 %v190_v11, %v181_v10 }
  0x88   : > { %v196_v21 = vmul.f32 %v190_v11, %v182_v12  ;;  %v197_v22 = vmul.f32 %v190_v11, %v183_v13  ;;  %v198_v23 = vmul.f32 %v190_v11, %v184_v14  ;;  %v199_v24 = vmul.f32 %v190_v11, %v185_v15 }
  0x8a   : > { %v204_v20 = vpop.permute.xlu0 %203 }
  0x8b   : > { %v206_v25 = vadd.f32 %v204_v20, %v192_v16  ;;  %v207_v26 = vadd.f32 %v204_v20, %v193_v17  ;;  %v208_v27 = vadd.f32 %v204_v20, %v194_v18  ;;  %v209_v28 = vadd.f32 %v204_v20, %v195_v19 }
  0x8c   : > { %v210_v29 = vadd.f32 %v204_v20, %v196_v21  ;;  %v211_v30 = vadd.f32 %v204_v20, %v197_v22  ;;  %v212_v31 = vadd.f32 %v204_v20, %v198_v23  ;;  %v213_v32 = vadd.f32 %v204_v20, %v199_v24 }
  0x8d   : > { %v214_v33 = vmax.f32 %v206_v25, 0.0  ;;  %v215_v34 = vmax.f32 %v207_v26, 0.0  ;;  %v216_v35 = vmax.f32 %v208_v27, 0.0  ;;  %v217_v36 = vmax.f32 %v209_v28, 0.0 }
  0x8e   : > { %v218_v37 = vmax.f32 %v210_v29, 0.0  ;;  %v219_v38 = vmax.f32 %v211_v30, 0.0  ;;  %v220_v39 = vmax.f32 %v212_v31, 0.0  ;;  %v221_v40 = vmax.f32 %v213_v32, 0.0 }
  0x8f   : > { %v329_v41 = vpack.c.bf16 %v215_v34, %v214_v33  ;;  %v330_v42 = vpack.c.bf16 %v217_v36, %v216_v35 }
  0x90   : > { %v331_v43 = vpack.c.bf16 %v219_v38, %v218_v37  ;;  %v332_v44 = vpack.c.bf16 %v221_v40, %v220_v39 }
  0x91   : > { %254 = vst [vmem:[%s172_s25] sm:$0xff] %v329_v41  ;;  %255 = vst [vmem:[%s172_s25 + $0x8] sm:$0xff] %v330_v42 }
  0x92   : > { %256 = vst [vmem:[%s172_s25 + $0x10] sm:$0xff] %v331_v43  ;;  %257 = vst [vmem:[%s172_s25 + $0x18] sm:$0xff] %v332_v44 }
  0x93 PF: > { %s13_s12 = sadd.s32 1, %s349_s12  }
  0x94   : > { %p10_p4 = scmp.ge.s32.totalorder %s13_s12, 4  }
  0x96   :  { %12 = sbr.rel (!%p10_p4) target bundleno = 1 (0x1), region = 62 }

// kernel: generator_forward.27
= control target key start
LH: loop header
LB: loop body
LE: loop exit
PB: predicated region body
PF: predicated region fallthrough
CT: control target
= control target key end

     0   :  { %s889_s9 = smov 0   ;;  %s891_s10 = smov 0   ;;  %s1063_s0 = inlined_call_operand.vmem [shape: bf16[16,32], index: 0, kind: input, shape index: {}]   ;;  %s1064_s1 = inlined_call_operand.vmem [shape: bf16[32,2304], index: 1, kind: input, shape index: {}]   ;;  %s1065_s2 = inlined_call_operand.vmem [shape: f32[16,2304], index: 2, kind: output, shape index: {}]  }
   0x1   :  { %s893_s11 = smov 0  }
   0x2 LB: > { %s701_s12 = sadd.s32 4294967295, %s869_s11   ;;  %s906_s13 = sadd.s32 1, %s869_s11   ;;  %s869_s11 = sphi %s893_s11, %s1069_s11   ;;  %s865_s10 = sphi %s891_s10, %s1068_s10   ;;  %s861_s9 = sphi %s889_s9, %s1067_s9  }
   0x3   : > { %s37_s14 = ssub.s32 %s869_s11, %s906_s13  ;;  %s40_s15 = sadd.s32 1, %s865_s10 }
   0x4   : > { %p38_p0 = scmp.eq.s32.totalorder %s37_s14, 0  ;;  %p47_p1 = scmp.ne.s32.totalorder %s865_s10, %s861_s9 }
   0x5   : > { %p48_p2 = scmp.eq.s32.totalorder %s869_s11, 0  ;;  %p77_p3 = scmp.eq.s32.totalorder %s701_s12, 1 }
   0x6   : > { %s917_s16 = scalar_select %p38_p0, %s865_s10, %s40_s15  }
   0x7   : > { %p49_p4 = por %p48_p2, %p47_p1  ;;  %p919_p5 = por %p77_p3, %p47_p1 }
   0x8   : > { %p704_p6 = scmp.ge.s32.totalorder %s869_s11, 2 }
   0xa   : > { %102 = sbr.rel (%p704_p6) target bundleno = 32 (0x20), region = 20 }
  0x11   : > { %105 = sbr.rel (!%p49_p4) target bundleno = 32 (0x20), region = 24  ;;  %s107_s18 = sand.u32 (%p49_p4), 1, %s865_s10  }
  0x12   : > { %s742_s19 = smul.u32 (%p49_p4), 36, %s869_s11 }
  0x13   : > { %s755_s20 = smul.u32 (%p49_p4), 144, %s107_s18 }
  0x14   : > { %s929_s23 = scalar_lea.vmem (%p49_p4), %s1064_s1, %s742_s19 }
  0x15   : > { %v127_v0 = vld [vmem:[%s929_s23] sm:$0xff] (%p49_p4)  ;;  %v129_v1 = vld [vmem:[%s929_s23 + $0x8] sm:$0xff] (%p49_p4)  ;;  %v131_v2 = vld [vmem:[%s929_s23 + $0x10] sm:$0xff] (%p49_p4)  ;;  %s934_s24 = scalar_lea.vmem (%p49_p4), [#allocation2], %s755_s20 }
  0x16   : > { %128 = vst [vmem:[%s934_s24] sm:$0xff] (%p49_p4), %v127_v0  ;;  %130 = vst [vmem:[%s934_s24 + $0x8] sm:$0xff] (%p49_p4), %v129_v1  ;;  %v133_v3 = vld [vmem:[%s929_s23 + $0x18] sm:$0xff] (%p49_p4)  ;;  %v135_v4 = vld [vmem:[%s929_s23 + $0x48] sm:$0xff] (%p49_p4) }
  0x17   : > { %132 = vst [vmem:[%s934_s24 + $0x10] sm:$0xff] (%p49_p4), %v131_v2  ;;  %v137_v5 = vld [vmem:[%s929_s23 + $0x50] sm:$0xff] (%p49_p4)  ;;  %134 = vst [vmem:[%s934_s24 + $0x18] sm:$0xff] (%p49_p4), %v133_v3  ;;  %v139_v6 = vld [vmem:[%s929_s23 + $0x58] sm:$0xff] (%p49_p4) }
  0x18   : > { %136 = vst [vmem:[%s934_s24 + $0x24] sm:$0xff] %v135_v4  ;;  %138 = vst [vmem:[%s934_s24 + $0x2c] sm:$0xff] %v137_v5  ;;  %v141_v7 = vld [vmem:[%s929_s23 + $0x60] sm:$0xff]  ;;  %v143_v8 = vld [vmem:[%s929_s23 + $0x90] sm:$0xff] }
  0x19   : > { %140 = vst [vmem:[%s934_s24 + $0x34] sm:$0xff] %v139_v6  ;;  %142 = vst [vmem:[%s934_s24 + $0x3c] sm:$0xff] %v141_v7  ;;  %v145_v9 = vld [vmem:[%s929_s23 + $0x98] sm:$0xff]  ;;  %v147_v10 = vld [vmem:[%s929_s23 + $0xa0] sm:$0xff] }
  0x1a   : > { %144 = vst [vmem:[%s934_s24 + $0x48] sm:$0xff] %v143_v8  ;;  %v149_v11 = vld [vmem:[%s929_s23 + $0xa8] sm:$0xff]  ;;  %146 = vst [vmem:[%s934_s24 + $0x50] sm:$0xff] %v145_v9  ;;  %v151_v12 = vld [vmem:[%s929_s23 + $0xd8] sm:$0xff] }
  0x1b   : > { %148 = vst [vmem:[%s934_s24 + $0x58] sm:$0xff] %v147_v10  ;;  %150 = vst [vmem:[%s934_s24 + $0x60] sm:$0xff] %v149_v11  ;;  %v153_v13 = vld [vmem:[%s929_s23 + $0xe0] sm:$0xff]  ;;  %v155_v14 = vld [vmem:[%s929_s23 + $0xe8] sm:$0xff] }
  0x1c   : > { %152 = vst [vmem:[%s934_s24 + $0x6c] sm:$0xff] %v151_v12  ;;  %154 = vst [vmem:[%s934_s24 + $0x74] sm:$0xff] %v153_v13  ;;  %v157_v15 = vld [vmem:[%s929_s23 + $0xf0] sm:$0xff]  ;;  %v706_v16 = vld [vmem:[%s929_s23 + $0x20] sm:$0xf] }
  0x1d   : > { %156 = vst [vmem:[%s934_s24 + $0x7c] sm:$0xff] %v155_v14  ;;  %v708_v17 = vld [vmem:[%s929_s23 + $0x68] sm:$0xf]  ;;  %158 = vst [vmem:[%s934_s24 + $0x84] sm:$0xff] %v157_v15  ;;  %v710_v18 = vld [vmem:[%s929_s23 + $0xb0] sm:$0xf] }
  0x1e   : > { %707 = vst [vmem:[%s934_s24 + $0x20] sm:$0xf] %v706_v16  ;;  %709 = vst [vmem:[%s934_s24 + $0x44] sm:$0xf] %v708_v17  ;;  %v712_v19 = vld [vmem:[%s929_s23 + $0xf8] sm:$0xf] }
  0x1f   : > { %711 = vst [vmem:[%s934_s24 + $0x68] sm:$0xf] %v710_v18  ;;  %713 = vst [vmem:[%s934_s24 + $0x8c] sm:$0xf] %v712_v19 }
  0x20 PF: > { %p714_p7 = scmp.ge.s32.totalorder %s869_s11, 1  ;;  %p178_p8 = scmp.lt.s32.totalorder %s869_s11, 3 }
  0x22   : > { %p179_p9 = pnand %p714_p7, %p178_p8 }
  0x23   : > { %s185_s25 = sand.u32 (!%p179_p9), 1, %s861_s9   ;;  %v871_v20 = vmov (!%p179_p9), 0   ;;  %v793_v27 = vld [vmem:[%s1063_s0] sm:$0xff] (!%p179_p9)   ;;  %vm327_vm0 = vcmask (!%p179_p9), 261120   ;;  %v872_v39 = vmov (!%p179_p9), 0.0   ;;  %vm873_vm1 = vmmov (!%p179_p9), 0  }
  0x24   : > { %182 = sbr.rel (%p179_p9) target bundleno = 299 (0x12b), region = 50  ;;  %363 = vmatprep.mubr.bf16.mxu0 (!%p179_p9), %v871_v20  ;;  %406 = vmatprep.mubr.bf16.mxu1 (!%p179_p9), %v871_v20 }
  0x25   : > { %s976_s26 = smul.u32 (!%p179_p9), 144, %s185_s25 }
  0x27   : > { %s979_s27 = scalar_lea.vmem (!%p179_p9), [#allocation2], %s976_s26  ;;  %s1008_s30 = scalar_lea.vmem (!%p179_p9), [#allocation3], %s976_s26 }
  0x28   : > { %v784_v21 = vld [vmem:[%s979_s27 + $0x4] ss:$36 sps:$4 sm:$0xff] (!%p179_p9)   ;;  %v787_v23 = vld [vmem:[%s979_s27 + $0x4c] ss:$36 sps:$4 sm:$0xff] (!%p179_p9)   ;;  %v796_v28 = vld [vmem:[%s979_s27 + $0x14] ss:$36 sps:$4 sm:$0xff] (!%p179_p9)  }
  0x29   : > { %v786_v22 = vld [vmem:[%s979_s27] ss:$36 sps:$4 sm:$0xff] (!%p179_p9)   ;;  %331 = vmatprep.subr.bf16.mxu0 (!%p179_p9), %v784_v21  ;;  %v789_v24 = vld [vmem:[%s979_s27 + $0x48] ss:$36 sps:$4 sm:$0xff] (!%p179_p9)   ;;  %v797_v29 = vld [vmem:[%s979_s27 + $0x54] ss:$36 sps:$4 sm:$0xff] (!%p179_p9)  }
  0x2a   : > { %332 = vmatpush1.bf16.msra.mxu0 (!%p179_p9), %v786_v22  ;;  %v790_v25 = vld [vmem:[%s979_s27 + $0xc] ss:$36 sps:$4 sm:$0xff] (!%p179_p9)   ;;  %v802_v32 = vld [vmem:[%s979_s27 + $0x5c] ss:$36 sps:$4 sm:$0xff] (!%p179_p9)   ;;  %v808_v36 = vld [vmem:[%s979_s27 + $0x64] ss:$36 sps:$4 sm:$0xff] (!%p179_p9)  }
  0x2b   : > { %v792_v26 = vld [vmem:[%s979_s27 + $0x8] ss:$36 sps:$4 sm:$0xff]   ;;  %333 = vmatprep.subr.bf16.mxu0 %v787_v23  ;;  %374 = vmatprep.subr.bf16.mxu1 %v790_v25  ;;  %v799_v30 = vld [vmem:[%s979_s27 + $0x50] ss:$36 sps:$4 sm:$0xff]   ;;  %v805_v33 = vld [vmem:[%s979_s27 + $0x1c] ss:$36 sps:$4 sm:$0xff]  }
  0x2c   : > { %375 = vmatpush1.bf16.msra.mxu1 %v792_v26  ;;  %v794_v31 = vld [vmem:[%s979_s27 + $0x10] ss:$36 sps:$4 sm:$0xff]   ;;  %v800_v34 = vld [vmem:[%s979_s27 + $0x58] ss:$36 sps:$4 sm:$0xff]   ;;  %v806_v37 = vld [vmem:[%s979_s27 + $0x60] ss:$36 sps:$4 sm:$0xff]  }
  0x2d   : > { %376 = vmatprep.subr.bf16.mxu1 %v797_v29  ;;  %v803_v35 = vld [vmem:[%s979_s27 + $0x18] ss:$36 sps:$4 sm:$0xff]   ;;  %v809_v38 = vld [vmem:[%s979_s27 + $0x20] ss:$36 sps:$4 sm:$0xff]   ;;  %v810_v40 = vld [vmem:[%s979_s27 + $0x68] ss:$36 sps:$4 sm:$0xff]  }
  0x2e   : > { %334 = vmatpush1.bf16.msra.mxu0 %v789_v24  ;;  %s743_s3 = smul.u32 (%p919_p5), 72, %s701_s12 }
  0x2f   : > { %417 = vmatprep.subr.bf16.mxu0 %v796_v28 }
  0x30   : > { %377 = vmatpush1.bf16.msra.mxu1 %v799_v30  ;;  %s589_s6 = scalar_lea.vmem (%p919_p5), %s1065_s2, %s743_s3 }
  0x31   : > { %734 = vmatmul.mubr.msk.bf16.vlgmr.msra.gmra.mrb[0].mxu0 %vm327_vm0, %v793_v27  ;;  %460 = vmatprep.subr.bf16.mxu1 %v805_v33 }
  0x32   : > { %418 = vmatpush1.bf16.msra.mxu0 %v794_v31  ;;  %449 = vmatprep.mubr.bf16.mxu0 %v871_v20 }
  0x33   : > { %419 = vmatprep.subr.bf16.mxu0 %v802_v32  ;;  %735 = vmatmul.mubr.msk.bf16.vlgmr.msra.gmra.mrb[0].mxu1 %vm327_vm0, %v793_v27 }
  0x34   : > { %461 = vmatpush1.bf16.msra.mxu1 %v803_v35  ;;  %492 = vmatprep.mubr.bf16.mxu1 %v871_v20 }
  0x35   : > { %462 = vmatprep.subr.bf16.mxu1 %v808_v36 }
  0x36   : > { %420 = vmatpush1.bf16.msra.mxu0 %v800_v34 }
  0x37   : > { %747 = vmatprep.subr.bf16.mxu0 %v872_v39 }
  0x38   : > { %463 = vmatpush1.bf16.msra.mxu1 %v806_v37 }
  0x39   : > { %736 = vmatmul.mubr.msk.bf16.vlgmr.msra.gmra.mrb[4].mxu0 %vm327_vm0, %v793_v27 }
  0x3a   : > { %748 = vmatpush3.bf16.msra.mxu0 %v809_v38  ;;  %751 = vmatprep.mubr.msk.bf16.mxu0 %vm873_vm1, %v872_v39 }
  0x3b   : > { %749 = vmatprep.subr.bf16.mxu0 %v872_v39  ;;  %737 = vmatmul.mubr.msk.bf16.vlgmr.msra.gmra.mrb[4].mxu1 %vm327_vm0, %v793_v27 }
  0x3e   : > { %750 = vmatpush3.bf16.msra.mxu0 %v810_v40 }
  0x41   : > { %752 = vmatmul.mubr.msk.bf16.vlgmr.msra.gmra.mrb[8].mxu0 %vm327_vm0, %v793_v27 }
 0x104   : > { %v365_v41 = vpop.f32.mrb[0].mxu0 }
 0x105   : > { %811 = vtanh.f32 %v365_v41  ;;  %v367_v42 = vpop.f32.mrb[1].mxu0 }
 0x106   : > { %813 = vtanh.f32 %v367_v42  ;;  %v369_v43 = vpop.f32.mrb[2].mxu0  ;;  %v408_v45 = vpop.f32.mrb[0].mxu1 }
 0x107   : > { %815 = vtanh.f32 %v369_v43  ;;  %v371_v44 = vpop.f32.mrb[3].mxu0  ;;  %v410_v46 = vpop.f32.mrb[1].mxu1 }
 0x108   : > { %817 = vtanh.f32 %v371_v44  ;;  %v412_v47 = vpop.f32.mrb[2].mxu1 }
 0x109   : > { %819 = vtanh.f32 %v408_v45  ;;  %v414_v48 = vpop.f32.mrb[3].mxu1 }
 0x10a   : > { %821 = vtanh.f32 %v410_v46 }
 0x10b   : > { %823 = vtanh.f32 %v412_v47 }
 0x10c   : > { %825 = vtanh.f32 %v414_v48  ;;  %v451_v49 = vpop.f32.mrb[4].mxu0 }
 0x10d   : > { %827 = vtanh.f32 %v451_v49  ;;  %v453_v50 = vpop.f32.mrb[5].mxu0 }
 0x10e   : > { %829 = vtanh.f32 %v453_v50  ;;  %v455_v51 = vpop.f32.mrb[6].mxu0  ;;  %v494_v54 = vpop.f32.mrb[4].mxu1 }
 0x10f   : > { %v812_v52 = vpop.eup %811  ;;  %831 = vtanh.f32 %v455_v51  ;;  %v457_v53 = vpop.f32.mrb[7].mxu0 }
 0x110   : > { %v814_v55 = vpop.eup %813  ;;  %562 = vst [vmem:[%s1008_s30] sm:$0xff] %v812_v52  ;;  %833 = vtanh.f32 %v457_v53  ;;  %v496_v56 = vpop.f32.mrb[5].mxu1 }
 0x111   : > { %v816_v57 = vpop.eup %815  ;;  %563 = vst [vmem:[%s1008_s30 + $0x8] sm:$0xff] %v814_v55  ;;  %835 = vtanh.f32 %v494_v54  ;;  %v498_v58 = vpop.f32.mrb[6].mxu1 }
 0x112   : > { %v818_v59 = vpop.eup %817  ;;  %571 = vst [vmem:[%s1008_s30 + $0x48] sm:$0xff] %v816_v57  ;;  %837 = vtanh.f32 %v496_v56  ;;  %v500_v60 = vpop.f32.mrb[7].mxu1 }
 0x113   : > { %v820_v61 = vpop.eup %819  ;;  %572 = vst [vmem:[%s1008_s30 + $0x50] sm:$0xff] %v818_v59  ;;  %839 = vtanh.f32 %v498_v58 }
 0x114   : > { %v822_v62 = vpop.eup %821  ;;  %564 = vst [vmem:[%s1008_s30 + $0x10] sm:$0xff] %v820_v61  ;;  %841 = vtanh.f32 %v500_v60  ;;  %v537_v63 = vpop.f32.mrb[8].mxu0 }
 0x115   : > { %v824_v0 = vpop.eup %823  ;;  %565 = vst [vmem:[%s1008_s30 + $0x18] sm:$0xff] %v822_v62  ;;  %843 = vtanh.f32 %v537_v63  ;;  %v753_v1 = vpop.f32.mrb[9].mxu0 }
 0x116   : > { %v826_v2 = vpop.eup %825  ;;  %573 = vst [vmem:[%s1008_s30 + $0x58] sm:$0xff] %v824_v0  ;;  %v540_v3 = vpop.f32.mrb[10].mxu0 }
 0x117   : > { %v828_v4 = vpop.eup %827  ;;  %574 = vst [vmem:[%s1008_s30 + $0x60] sm:$0xff] %v826_v2  ;;  %845 = vtanh.f32 %v540_v3  ;;  %v754_v5 = vpop.f32.mrb[11].mxu0  ;;  %v602_v15 = vld [vmem:[%s1008_s30] sm:$0xff] (%p919_p5) }
 0x118   : > { %v830_v6 = vpop.eup %829  ;;  %566 = vst [vmem:[%s1008_s30 + $0x20] sm:$0xff] %v828_v4  ;;  %v604_v16 = vld [vmem:[%s1008_s30 + $0x8] sm:$0xff] (%p919_p5)  ;;  %603 = vst [vmem:[%s589_s6] sm:$0xff] (%p919_p5), %v602_v15 }
 0x119   : > { %v832_v7 = vpop.eup %831  ;;  %567 = vst [vmem:[%s1008_s30 + $0x28] sm:$0xff] %v830_v6  ;;  %605 = vst [vmem:[%s589_s6 + $0x8] sm:$0xff] (%p919_p5), %v604_v16  ;;  %v620_v24 = vld [vmem:[%s1008_s30 + $0x48] sm:$0xff] (%p919_p5) }
 0x11a   : > { %v834_v8 = vpop.eup %833  ;;  %575 = vst [vmem:[%s1008_s30 + $0x68] sm:$0xff] %v832_v7  ;;  %v622_v25 = vld [vmem:[%s1008_s30 + $0x50] sm:$0xff] (%p919_p5)  ;;  %621 = vst [vmem:[%s589_s6 + $0x90] sm:$0xff] (%p919_p5), %v620_v24 }
 0x11b   : > { %v836_v9 = vpop.eup %835  ;;  %576 = vst [vmem:[%s1008_s30 + $0x70] sm:$0xff] %v834_v8  ;;  %v606_v17 = vld [vmem:[%s1008_s30 + $0x10] sm:$0xff] (%p919_p5)  ;;  %623 = vst [vmem:[%s589_s6 + $0x98] sm:$0xff] (%p919_p5), %v622_v25 }
 0x11c   : > { %v838_v10 = vpop.eup %837  ;;  %568 = vst [vmem:[%s1008_s30 + $0x30] sm:$0xff] %v836_v9  ;;  %586 = sbr.rel (!%p919_p5) target bundleno = 299 (0x12b), region = 58  ;;  %v608_v18 = vld [vmem:[%s1008_s30 + $0x18] sm:$0xff] (%p919_p5)  ;;  %607 = vst [vmem:[%s589_s6 + $0x10] sm:$0xff] (%p919_p5), %v606_v17 }
 0x11d   : > { %v840_v11 = vpop.eup %839  ;;  %569 = vst [vmem:[%s1008_s30 + $0x38] sm:$0xff] %v838_v10  ;;  %609 = vst [vmem:[%s589_s6 + $0x18] sm:$0xff] (%p919_p5), %v608_v18  ;;  %v624_v26 = vld [vmem:[%s1008_s30 + $0x58] sm:$0xff] (%p919_p5) }
 0x11e   : > { %v842_v12 = vpop.eup %841  ;;  %577 = vst [vmem:[%s1008_s30 + $0x78] sm:$0xff] %v840_v11  ;;  %625 = vst [vmem:[%s589_s6 + $0xa0] sm:$0xff] (%p919_p5), %v624_v26  ;;  %v626_v27 = vld [vmem:[%s1008_s30 + $0x60] sm:$0xff] (%p919_p5) }
 0x11f   : > { %v844_v13 = vpop.eup %843  ;;  %578 = vst [vmem:[%s1008_s30 + $0x80] sm:$0xff] %v842_v12  ;;  %v610_v19 = vld [vmem:[%s1008_s30 + $0x20] sm:$0xff] (%p919_p5)  ;;  %627 = vst [vmem:[%s589_s6 + $0xa8] sm:$0xff] (%p919_p5), %v626_v27 }
 0x120   : > { %570 = vst [vmem:[%s1008_s30 + $0x40] sm:$0xff] %v844_v13  ;;  %v612_v20 = vld [vmem:[%s1008_s30 + $0x28] sm:$0xff] (%p919_p5)  ;;  %611 = vst [vmem:[%s589_s6 + $0x20] sm:$0xff] (%p919_p5), %v610_v19 }
 0x121   : > { %v846_v14 = vpop.eup %845  ;;  %613 = vst [vmem:[%s589_s6 + $0x28] sm:$0xff] (%p919_p5), %v612_v20  ;;  %v628_v28 = vld [vmem:[%s1008_s30 + $0x68] sm:$0xff] (%p919_p5) }
 0x122   : > { %579 = vst [vmem:[%s1008_s30 + $0x88] sm:$0xff] %v846_v14  ;;  %v630_v29 = vld [vmem:[%s1008_s30 + $0x70] sm:$0xff] (%p919_p5)  ;;  %629 = vst [vmem:[%s589_s6 + $0xb0] sm:$0xff] (%p919_p5), %v628_v28 }
 0x123   : > { %v614_v21 = vld [vmem:[%s1008_s30 + $0x30] sm:$0xff]  ;;  %631 = vst [vmem:[%s589_s6 + $0xb8] sm:$0xff] %v630_v29 }
 0x124   : > { %v616_v22 = vld [vmem:[%s1008_s30 + $0x38] sm:$0xff]  ;;  %615 = vst [vmem:[%s589_s6 + $0x30] sm:$0xff] %v614_v21 }
 0x125   : > { %617 = vst [vmem:[%s589_s6 + $0x38] sm:$0xff] %v616_v22  ;;  %v632_v30 = vld [vmem:[%s1008_s30 + $0x78] sm:$0xff] }
 0x126   : > { %v634_v31 = vld [vmem:[%s1008_s30 + $0x80] sm:$0xff]  ;;  %633 = vst [vmem:[%s589_s6 + $0xc0] sm:$0xff] %v632_v30 }
 0x127   : > { %v618_v23 = vld [vmem:[%s1008_s30 + $0x40] sm:$0xff]  ;;  %635 = vst [vmem:[%s589_s6 + $0xc8] sm:$0xff] %v634_v31 }
 0x128   : > { %619 = vst [vmem:[%s589_s6 + $0x40] sm:$0xff] %v618_v23 }
 0x129   : > { %v636_v32 = vld [vmem:[%s1008_s30 + $0x88] sm:$0xff] }
 0x12a   : > { %637 = vst [vmem:[%s589_s6 + $0xd0] sm:$0xff] %v636_v32 }
 0x12b PF: > { %p9_p10 = scmp.ge.s32.totalorder %s906_s13, 4   ;;  %s1067_s9 = smov %s865_s10 }
 0x12c   : > { %s1068_s10 = smov %s917_s16  ;;  %s1069_s11 = smov %s906_s13 }
 0x12d   :  { %11 = sbr.rel (!%p9_p10) target bundleno = 2 (0x2), region = 118 }

</bundles_post_ra>
